<compile_context>
chip_gen: v5e
topology: v5e:2x2
jax: 0.10.0
libtpu: 0.0.40
codegen_flags: <defaults>
</compile_context>

<pallas_src>
import functools

import jax
import jax.numpy as jnp
from jax.experimental import pallas as pl
from jax.experimental.pallas import tpu as pltpu

LANE = 128


def _round_up(n, m=LANE):
    return ((n + m - 1) // m) * m


# ------------------------------ fused kernel ------------------------------


def _tcn_fused_kernel(*refs, K, dilations, has_down, T, P_max, Cp):
    # refs layout:
    #   src_ref, W_emb_ref, b_emb_ref,
    #   per block: w1 (K*Cp, Cp), b1 (1, Cp), w2 (K*Cp, Cp), b2 (1, Cp),
    #              [wd (Cp, Cp), bd (1, Cp)  -- only if has_down[i]],
    #   out_ref (T, Cp),
    #   act (T+P_max, Cp) scratch, hid (T+P_max, Cp) scratch.
    it = iter(refs)
    src_ref = next(it)
    W_emb_ref = next(it)
    b_emb_ref = next(it)
    blk_refs = []
    for hd in has_down:
        w1 = next(it)
        b1 = next(it)
        w2 = next(it)
        b2 = next(it)
        wd = next(it) if hd else None
        bd = next(it) if hd else None
        blk_refs.append((w1, b1, w2, b2, wd, bd))
    out_ref = next(it)
    act = next(it)  # padded activation buffer
    hid = next(it)  # padded conv1-output buffer

    # Causal left pad lives in the scratch: rows [0, P_max) are zero and are
    # never written afterwards (ref slicing only -- no value-level jnp.pad).
    if P_max > 0:
        act[pl.ds(0, P_max), :] = jnp.zeros((P_max, Cp), jnp.float32)
        hid[pl.ds(0, P_max), :] = jnp.zeros((P_max, Cp), jnp.float32)

    # Embedding linear (Dropout == identity in eval), written lane-dense.
    act[pl.ds(P_max, T), :] = (
        jnp.dot(src_ref[...], W_emb_ref[...], preferred_element_type=jnp.float32)
        + b_emb_ref[...]
    )

    n_blocks = len(has_down)
    for i, (w1, b1, w2, b2, wd, bd) in enumerate(blk_refs):
        d = dilations[i]
        p = (K - 1) * d
        base = P_max - p  # start row of this block's (T + p) causal window

        # conv1: im2col the K taps into one matmul (contraction dim K*Cp).
        slab1 = jnp.concatenate(
            [act[pl.ds(base + j * d, T), :] for j in range(K)], axis=-1
        )
        h1 = jnp.maximum(
            jnp.dot(slab1, w1[...], preferred_element_type=jnp.float32) + b1[...],
            0.0,
        )
        hid[pl.ds(P_max, T), :] = h1

        # conv2: same causal dilated conv on h1 (read from padded scratch).
        slab2 = jnp.concatenate(
            [hid[pl.ds(base + j * d, T), :] for j in range(K)], axis=-1
        )
        h2 = jnp.maximum(
            jnp.dot(slab2, w2[...], preferred_element_type=jnp.float32) + b2[...],
            0.0,
        )

        # Residual branch: identity (no matmul) when the original in/out
        # channel counts match, else 1x1 downsample conv.
        x_in = act[pl.ds(P_max, T), :]
        if wd is None:
            res = x_in
        else:
            res = (
                jnp.dot(x_in, wd[...], preferred_element_type=jnp.float32) + bd[...]
            )

        y = jnp.maximum(h2 + res, 0.0)
        if i == n_blocks - 1:
            out_ref[...] = y
        else:
            act[pl.ds(P_max, T), :] = y


# ------------------------------ parameter setup ------------------------------


def _weight_norm_conv(key, c_out, c_in, ksize):
    """Effective weight of weight_norm(Conv1d): w = g * v / ||v|| (per out-ch)."""
    kv, kg, kb = jax.random.split(key, 3)
    v = jax.random.normal(kv, (c_out, c_in, ksize), jnp.float32) * 0.01
    g = jax.random.uniform(kg, (c_out,), jnp.float32, minval=0.5, maxval=1.5)
    norm = jnp.sqrt(jnp.sum(v * v, axis=(1, 2), keepdims=True))
    w = g.reshape(-1, 1, 1) * v / norm  # (c_out, c_in, k) PyTorch layout
    b = jax.random.normal(kb, (c_out,), jnp.float32) * 0.01
    # kernel layout: (k, c_in, c_out) so each tap is a plain matmul
    return jnp.transpose(w, (2, 1, 0)), b


def init_params(key, *, num_inputs, num_channels, input_size, d_word_vec, kernel_size):
    """Raw (unpadded) parameters; layouts match the pure-jnp reference."""
    n_blocks = len(num_channels)
    keys = jax.random.split(key, 1 + n_blocks)

    k_w, k_b = jax.random.split(keys[0])
    W_emb = jax.random.normal(k_w, (input_size, d_word_vec), jnp.float32) * 0.1
    b_emb = jax.random.normal(k_b, (d_word_vec,), jnp.float32) * 0.1

    blocks = []
    in_c = num_inputs
    for i, out_c in enumerate(num_channels):
        k1, k2, kd = jax.random.split(keys[1 + i], 3)
        w1, b1 = _weight_norm_conv(k1, out_c, in_c, kernel_size)
        w2, b2 = _weight_norm_conv(k2, out_c, out_c, kernel_size)
        if in_c != out_c:
            kdw, kdb = jax.random.split(kd)
            wd_t = jax.random.normal(kdw, (out_c, in_c, 1), jnp.float32) * 0.01
            wd = jnp.transpose(wd_t[:, :, 0], (1, 0))  # (in_c, out_c)
            bd = jax.random.normal(kdb, (out_c,), jnp.float32) * 0.01
        else:
            wd = None  # identity residual: no downsample conv in the module
            bd = None
        blocks.append(dict(w1=w1, b1=b1, w2=w2, b2=b2, wd=wd, bd=bd, dilation=2 ** i))
        in_c = out_c
    return dict(W_emb=W_emb, b_emb=b_emb, blocks=blocks)


def prepare_kernel_params(params, *, kernel_size):
    """Pad channels to a lane-dense width Cp and pre-reshape conv weights for im2col."""
    d_word_vec = params["W_emb"].shape[1]
    widths = [d_word_vec] + [blk["w1"].shape[2] for blk in params["blocks"]]
    Cp = _round_up(max(widths))

    def pad_cols(a, cols):
        return jnp.pad(a, ((0, 0), (0, cols - a.shape[1])))

    W_emb_p = pad_cols(params["W_emb"], Cp)  # (input_size, Cp)
    b_emb_p = jnp.pad(params["b_emb"], (0, Cp - d_word_vec)).reshape(1, Cp)

    blocks_p = []
    for blk in params["blocks"]:
        K, cin, cout = blk["w1"].shape
        w1_p = jnp.pad(blk["w1"], ((0, 0), (0, Cp - cin), (0, Cp - cout)))
        w1_p = w1_p.reshape(K * Cp, Cp)  # rows grouped by tap -> im2col layout
        b1_p = jnp.pad(blk["b1"], (0, Cp - cout)).reshape(1, Cp)
        w2_p = jnp.pad(blk["w2"], ((0, 0), (0, Cp - cout), (0, Cp - cout)))
        w2_p = w2_p.reshape(K * Cp, Cp)
        b2_p = jnp.pad(blk["b2"], (0, Cp - cout)).reshape(1, Cp)
        if blk["wd"] is not None:
            wd_p = jnp.pad(blk["wd"], ((0, Cp - cin), (0, Cp - cout)))
            bd_p = jnp.pad(blk["bd"], (0, Cp - cout)).reshape(1, Cp)
        else:
            wd_p, bd_p = None, None
        blocks_p.append(
            dict(w1=w1_p, b1=b1_p, w2=w2_p, b2=b2_p, wd=wd_p, bd=bd_p,
                 dilation=blk["dilation"])
        )
    return dict(Cp=Cp, W_emb=W_emb_p, b_emb=b_emb_p, blocks=blocks_p)


# ------------------------------ forward passes ------------------------------


def temporal_conv_net(src, kparams, *, kernel_size, out_channels):
    """src: (B, T, input_size) -> (B, T, out_channels). Single fused pallas_call."""
    B, T, C_src = src.shape
    Cp = kparams["Cp"]
    blocks = kparams["blocks"]
    K = kernel_size
    dilations = tuple(b["dilation"] for b in blocks)
    has_down = tuple(b["wd"] is not None for b in blocks)
    P_max = (K - 1) * max(dilations)

    args = [src, kparams["W_emb"], kparams["b_emb"]]
    in_specs = [
        pl.BlockSpec((None, T, C_src), lambda b: (b, 0, 0)),
        pl.BlockSpec((C_src, Cp), lambda b: (0, 0)),
        pl.BlockSpec((1, Cp), lambda b: (0, 0)),
    ]
    for blk in blocks:
        args += [blk["w1"], blk["b1"], blk["w2"], blk["b2"]]
        in_specs += [
            pl.BlockSpec((K * Cp, Cp), lambda b: (0, 0)),
            pl.BlockSpec((1, Cp), lambda b: (0, 0)),
            pl.BlockSpec((K * Cp, Cp), lambda b: (0, 0)),
            pl.BlockSpec((1, Cp), lambda b: (0, 0)),
        ]
        if blk["wd"] is not None:
            args += [blk["wd"], blk["bd"]]
            in_specs += [
                pl.BlockSpec((Cp, Cp), lambda b: (0, 0)),
                pl.BlockSpec((1, Cp), lambda b: (0, 0)),
            ]

    kernel = functools.partial(
        _tcn_fused_kernel,
        K=K, dilations=dilations, has_down=has_down, T=T, P_max=P_max, Cp=Cp,
    )

    # Advisory cost estimate for the XLA scheduler.
    flops = 2 * B * T * C_src * Cp
    for blk in blocks:
        flops += 2 * B * T * (2 * K * Cp * Cp)
        if blk["wd"] is not None:
            flops += 2 * B * T * Cp * Cp
    bytes_accessed = 4 * (src.size + B * T * Cp) + sum(4 * a.size for a in args[1:])

    out = pl.pallas_call(
        kernel,
        out_shape=jax.ShapeDtypeStruct((B, T, Cp), jnp.float32),
        grid=(B,),
        in_specs=in_specs,
        out_specs=pl.BlockSpec((None, T, Cp), lambda b: (b, 0, 0)),
        scratch_shapes=[
            pltpu.VMEM((T + P_max, Cp), jnp.float32),  # padded activation
            pltpu.VMEM((T + P_max, Cp), jnp.float32),  # padded conv1 output
        ],
        compiler_params=pltpu.CompilerParams(
            dimension_semantics=("parallel",),
            vmem_limit_bytes=64 * 1024 * 1024,
        ),
        cost_estimate=pl.CostEstimate(
            flops=flops, transcendentals=0, bytes_accessed=bytes_accessed
        ),
    )(*args)
    return out[..., :out_channels]


def reference_forward(src, params, *, kernel_size):
    """Pure-jnp reference with identical math (sanity check)."""
    B, T, _ = src.shape
    x = src @ params["W_emb"] + params["b_emb"]
    for blk in params["blocks"]:
        d = blk["dilation"]
        K = kernel_size
        p = (K - 1) * d

        def causal_conv(h, w, b):
            hp = jnp.pad(h, ((0, 0), (p, 0), (0, 0)))
            acc = jnp.zeros((B, T, w.shape[2]), jnp.float32)
            for j in range(K):
                acc = acc + jnp.einsum("btc,cd->btd", hp[:, j * d: j * d + T, :], w[j])
            return acc + b

        h1 = jnp.maximum(causal_conv(x, blk["w1"], blk["b1"]), 0.0)
        h2 = jnp.maximum(causal_conv(h1, blk["w2"], blk["b2"]), 0.0)
        if blk["wd"] is None:
            res = x
        else:
            res = jnp.einsum("btc,cd->btd", x, blk["wd"]) + blk["bd"]
        x = jnp.maximum(h2 + res, 0.0)
    return x


# ----------------------------------- main -----------------------------------

if __name__ == "__main__":
    B, T = 2, 8
    input_size, d_word_vec = 20, 10
    num_inputs = d_word_vec  # conv1 of block 0 consumes the embedding width
    num_channels = [16, 32, 32]  # last block exercises the identity-residual path
    kernel_size = 2

    key = jax.random.PRNGKey(0)
    k_params, k_x = jax.random.split(key)
    params = init_params(
        k_params,
        num_inputs=num_inputs,
        num_channels=num_channels,
        input_size=input_size,
        d_word_vec=d_word_vec,
        kernel_size=kernel_size,
    )
    kparams = prepare_kernel_params(params, kernel_size=kernel_size)
    src = jax.random.normal(k_x, (B, T, input_size), jnp.float32)

    out = temporal_conv_net(
        src, kparams, kernel_size=kernel_size, out_channels=num_channels[-1]
    )
    out = jax.block_until_ready(out)

    assert out.shape == (B, T, num_channels[-1]), out.shape
    ref = reference_forward(src, params, kernel_size=kernel_size)
    assert jnp.allclose(out, ref, rtol=1e-2, atol=1e-3), float(
        jnp.max(jnp.abs(out - ref))
    )
    print("KERNEL_OK")
</pallas_src>

<mosaic_0001>
module attributes {stable_mosaic.version = 11 : i64} {
  func.func @_tcn_fused_kernel(%arg0: i32, %arg1: memref<1x8x20xf32, #tpu.memory_space<vmem>>, %arg2: memref<20x128xf32, #tpu.memory_space<vmem>>, %arg3: memref<1x128xf32, #tpu.memory_space<vmem>>, %arg4: memref<256x128xf32, #tpu.memory_space<vmem>>, %arg5: memref<1x128xf32, #tpu.memory_space<vmem>>, %arg6: memref<256x128xf32, #tpu.memory_space<vmem>>, %arg7: memref<1x128xf32, #tpu.memory_space<vmem>>, %arg8: memref<128x128xf32, #tpu.memory_space<vmem>>, %arg9: memref<1x128xf32, #tpu.memory_space<vmem>>, %arg10: memref<256x128xf32, #tpu.memory_space<vmem>>, %arg11: memref<1x128xf32, #tpu.memory_space<vmem>>, %arg12: memref<256x128xf32, #tpu.memory_space<vmem>>, %arg13: memref<1x128xf32, #tpu.memory_space<vmem>>, %arg14: memref<128x128xf32, #tpu.memory_space<vmem>>, %arg15: memref<1x128xf32, #tpu.memory_space<vmem>>, %arg16: memref<256x128xf32, #tpu.memory_space<vmem>>, %arg17: memref<1x128xf32, #tpu.memory_space<vmem>>, %arg18: memref<256x128xf32, #tpu.memory_space<vmem>>, %arg19: memref<1x128xf32, #tpu.memory_space<vmem>>, %arg20: memref<1x8x128xf32, #tpu.memory_space<vmem>>, %arg21: memref<12x128xf32, #tpu.memory_space<vmem>>, %arg22: memref<12x128xf32, #tpu.memory_space<vmem>>) attributes {dimension_semantics = [#tpu.dimension_semantics<parallel>], iteration_bounds = array<i64: 2>, scalar_prefetch = 0 : i64, scratch_operands = 2 : i64, tpu.core_type = #tpu.core_type<tc>, window_params = [{transform_indices = @transform_0, window_bounds = array<i64: 1, 8, 20>}, {pipeline_mode = #tpu.pipeline_mode<synchronous>, transform_indices = @transform_1, window_bounds = array<i64: 20, 128>}, {pipeline_mode = #tpu.pipeline_mode<synchronous>, transform_indices = @transform_2, window_bounds = array<i64: 1, 128>}, {pipeline_mode = #tpu.pipeline_mode<synchronous>, transform_indices = @transform_3, window_bounds = array<i64: 256, 128>}, {pipeline_mode = #tpu.pipeline_mode<synchronous>, transform_indices = @transform_4, window_bounds = array<i64: 1, 128>}, {pipeline_mode = #tpu.pipeline_mode<synchronous>, transform_indices = @transform_5, window_bounds = array<i64: 256, 128>}, {pipeline_mode = #tpu.pipeline_mode<synchronous>, transform_indices = @transform_6, window_bounds = array<i64: 1, 128>}, {pipeline_mode = #tpu.pipeline_mode<synchronous>, transform_indices = @transform_7, window_bounds = array<i64: 128, 128>}, {pipeline_mode = #tpu.pipeline_mode<synchronous>, transform_indices = @transform_8, window_bounds = array<i64: 1, 128>}, {pipeline_mode = #tpu.pipeline_mode<synchronous>, transform_indices = @transform_9, window_bounds = array<i64: 256, 128>}, {pipeline_mode = #tpu.pipeline_mode<synchronous>, transform_indices = @transform_10, window_bounds = array<i64: 1, 128>}, {pipeline_mode = #tpu.pipeline_mode<synchronous>, transform_indices = @transform_11, window_bounds = array<i64: 256, 128>}, {pipeline_mode = #tpu.pipeline_mode<synchronous>, transform_indices = @transform_12, window_bounds = array<i64: 1, 128>}, {pipeline_mode = #tpu.pipeline_mode<synchronous>, transform_indices = @transform_13, window_bounds = array<i64: 128, 128>}, {pipeline_mode = #tpu.pipeline_mode<synchronous>, transform_indices = @transform_14, window_bounds = array<i64: 1, 128>}, {pipeline_mode = #tpu.pipeline_mode<synchronous>, transform_indices = @transform_15, window_bounds = array<i64: 256, 128>}, {pipeline_mode = #tpu.pipeline_mode<synchronous>, transform_indices = @transform_16, window_bounds = array<i64: 1, 128>}, {pipeline_mode = #tpu.pipeline_mode<synchronous>, transform_indices = @transform_17, window_bounds = array<i64: 256, 128>}, {pipeline_mode = #tpu.pipeline_mode<synchronous>, transform_indices = @transform_18, window_bounds = array<i64: 1, 128>}, {transform_indices = @transform_19, window_bounds = array<i64: 1, 8, 128>}]} {
    %cst = arith.constant 0.000000e+00 : f32
    %0 = vector.broadcast %cst : f32 to vector<4x128xf32>
    %c0 = arith.constant 0 : index
    %c0_0 = arith.constant 0 : index
    %1 = vector.load %arg21[%c0, %c0_0] : memref<12x128xf32, #tpu.memory_space<vmem>>, vector<4x128xf32>
    tpu.vector_store %arg21[%c0, %c0_0], %0 {strides = array<i32>} : memref<12x128xf32, #tpu.memory_space<vmem>>, vector<4x128xf32>,
    %cst_1 = arith.constant 0.000000e+00 : f32
    %2 = vector.broadcast %cst_1 : f32 to vector<4x128xf32>
    %c0_2 = arith.constant 0 : index
    %c0_3 = arith.constant 0 : index
    %3 = vector.load %arg22[%c0_2, %c0_3] : memref<12x128xf32, #tpu.memory_space<vmem>>, vector<4x128xf32>
    tpu.vector_store %arg22[%c0_2, %c0_3], %2 {strides = array<i32>} : memref<12x128xf32, #tpu.memory_space<vmem>>, vector<4x128xf32>,
    %c0_4 = arith.constant 0 : index
    %c0_5 = arith.constant 0 : index
    %c0_6 = arith.constant 0 : index
    %4 = vector.load %arg1[%c0_4, %c0_5, %c0_6] : memref<1x8x20xf32, #tpu.memory_space<vmem>>, vector<1x8x20xf32>
    %5 = vector.shape_cast %4 : vector<1x8x20xf32> to vector<8x20xf32>
    %c0_7 = arith.constant 0 : index
    %c0_8 = arith.constant 0 : index
    %6 = vector.load %arg2[%c0_7, %c0_8] : memref<20x128xf32, #tpu.memory_space<vmem>>, vector<20x128xf32>
    %cst_9 = arith.constant dense<0.000000e+00> : vector<8x128xf32>
    %7 = tpu.matmul %5, %6, %cst_9 {dimension_numbers = #tpu.dot_dimension_numbers<[1], [0], [0], [1], [0, 0, 1, 1], [], []>} : vector<8x20xf32>, vector<20x128xf32>, vector<8x128xf32> -> vector<8x128xf32>
    %c0_10 = arith.constant 0 : index
    %c0_11 = arith.constant 0 : index
    %8 = vector.load %arg3[%c0_10, %c0_11] : memref<1x128xf32, #tpu.memory_space<vmem>>, vector<1x128xf32>
    %9 = vector.broadcast %8 : vector<1x128xf32> to vector<8x128xf32>
    %10 = arith.addf %7, %9 : vector<8x128xf32>
    %c4 = arith.constant 4 : index
    %c0_12 = arith.constant 0 : index
    %11 = vector.load %arg21[%c4, %c0_12] : memref<12x128xf32, #tpu.memory_space<vmem>>, vector<8x128xf32>
    tpu.vector_store %arg21[%c4, %c0_12], %10 {strides = array<i32>} : memref<12x128xf32, #tpu.memory_space<vmem>>, vector<8x128xf32>,
    %c3 = arith.constant 3 : index
    %c0_13 = arith.constant 0 : index
    %12 = vector.load %arg21[%c3, %c0_13] : memref<12x128xf32, #tpu.memory_space<vmem>>, vector<8x128xf32>
    %c4_14 = arith.constant 4 : index
    %c0_15 = arith.constant 0 : index
    %13 = vector.load %arg21[%c4_14, %c0_15] : memref<12x128xf32, #tpu.memory_space<vmem>>, vector<8x128xf32>
    %14 = tpu.concatenate %12, %13 in 1 : vector<8x128xf32>, vector<8x128xf32> -> vector<8x256xf32>
    %c0_16 = arith.constant 0 : index
    %c0_17 = arith.constant 0 : index
    %15 = vector.load %arg4[%c0_16, %c0_17] : memref<256x128xf32, #tpu.memory_space<vmem>>, vector<256x128xf32>
    %cst_18 = arith.constant dense<0.000000e+00> : vector<8x128xf32>
    %16 = tpu.matmul %14, %15, %cst_18 {dimension_numbers = #tpu.dot_dimension_numbers<[1], [0], [0], [1], [0, 0, 1, 1], [], []>} : vector<8x256xf32>, vector<256x128xf32>, vector<8x128xf32> -> vector<8x128xf32>
    %c0_19 = arith.constant 0 : index
    %c0_20 = arith.constant 0 : index
    %17 = vector.load %arg5[%c0_19, %c0_20] : memref<1x128xf32, #tpu.memory_space<vmem>>, vector<1x128xf32>
    %18 = vector.broadcast %17 : vector<1x128xf32> to vector<8x128xf32>
    %19 = arith.addf %16, %18 : vector<8x128xf32>
    %cst_21 = arith.constant 0.000000e+00 : f32
    %20 = vector.broadcast %cst_21 : f32 to vector<8x128xf32>
    %21 = arith.maximumf %19, %20 : vector<8x128xf32>
    %c4_22 = arith.constant 4 : index
    %c0_23 = arith.constant 0 : index
    %22 = vector.load %arg22[%c4_22, %c0_23] : memref<12x128xf32, #tpu.memory_space<vmem>>, vector<8x128xf32>
    tpu.vector_store %arg22[%c4_22, %c0_23], %21 {strides = array<i32>} : memref<12x128xf32, #tpu.memory_space<vmem>>, vector<8x128xf32>,
    %c3_24 = arith.constant 3 : index
    %c0_25 = arith.constant 0 : index
    %23 = vector.load %arg22[%c3_24, %c0_25] : memref<12x128xf32, #tpu.memory_space<vmem>>, vector<8x128xf32>
    %c4_26 = arith.constant 4 : index
    %c0_27 = arith.constant 0 : index
    %24 = vector.load %arg22[%c4_26, %c0_27] : memref<12x128xf32, #tpu.memory_space<vmem>>, vector<8x128xf32>
    %25 = tpu.concatenate %23, %24 in 1 : vector<8x128xf32>, vector<8x128xf32> -> vector<8x256xf32>
    %c0_28 = arith.constant 0 : index
    %c0_29 = arith.constant 0 : index
    %26 = vector.load %arg6[%c0_28, %c0_29] : memref<256x128xf32, #tpu.memory_space<vmem>>, vector<256x128xf32>
    %cst_30 = arith.constant dense<0.000000e+00> : vector<8x128xf32>
    %27 = tpu.matmul %25, %26, %cst_30 {dimension_numbers = #tpu.dot_dimension_numbers<[1], [0], [0], [1], [0, 0, 1, 1], [], []>} : vector<8x256xf32>, vector<256x128xf32>, vector<8x128xf32> -> vector<8x128xf32>
    %c0_31 = arith.constant 0 : index
    %c0_32 = arith.constant 0 : index
    %28 = vector.load %arg7[%c0_31, %c0_32] : memref<1x128xf32, #tpu.memory_space<vmem>>, vector<1x128xf32>
    %29 = vector.broadcast %28 : vector<1x128xf32> to vector<8x128xf32>
    %30 = arith.addf %27, %29 : vector<8x128xf32>
    %cst_33 = arith.constant 0.000000e+00 : f32
    %31 = vector.broadcast %cst_33 : f32 to vector<8x128xf32>
    %32 = arith.maximumf %30, %31 : vector<8x128xf32>
    %c4_34 = arith.constant 4 : index
    %c0_35 = arith.constant 0 : index
    %33 = vector.load %arg21[%c4_34, %c0_35] : memref<12x128xf32, #tpu.memory_space<vmem>>, vector<8x128xf32>
    %c0_36 = arith.constant 0 : index
    %c0_37 = arith.constant 0 : index
    %34 = vector.load %arg8[%c0_36, %c0_37] : memref<128x128xf32, #tpu.memory_space<vmem>>, vector<128x128xf32>
    %cst_38 = arith.constant dense<0.000000e+00> : vector<8x128xf32>
    %35 = tpu.matmul %33, %34, %cst_38 {dimension_numbers = #tpu.dot_dimension_numbers<[1], [0], [0], [1], [0, 0, 1, 1], [], []>} : vector<8x128xf32>, vector<128x128xf32>, vector<8x128xf32> -> vector<8x128xf32>
    %c0_39 = arith.constant 0 : index
    %c0_40 = arith.constant 0 : index
    %36 = vector.load %arg9[%c0_39, %c0_40] : memref<1x128xf32, #tpu.memory_space<vmem>>, vector<1x128xf32>
    %37 = vector.broadcast %36 : vector<1x128xf32> to vector<8x128xf32>
    %38 = arith.addf %35, %37 : vector<8x128xf32>
    %39 = arith.addf %32, %38 : vector<8x128xf32>
    %cst_41 = arith.constant 0.000000e+00 : f32
    %40 = vector.broadcast %cst_41 : f32 to vector<8x128xf32>
    %41 = arith.maximumf %39, %40 : vector<8x128xf32>
    %c4_42 = arith.constant 4 : index
    %c0_43 = arith.constant 0 : index
    %42 = vector.load %arg21[%c4_42, %c0_43] : memref<12x128xf32, #tpu.memory_space<vmem>>, vector<8x128xf32>
    tpu.vector_store %arg21[%c4_42, %c0_43], %41 {strides = array<i32>} : memref<12x128xf32, #tpu.memory_space<vmem>>, vector<8x128xf32>,
    %c2 = arith.constant 2 : index
    %c0_44 = arith.constant 0 : index
    %43 = vector.load %arg21[%c2, %c0_44] : memref<12x128xf32, #tpu.memory_space<vmem>>, vector<8x128xf32>
    %c4_45 = arith.constant 4 : index
    %c0_46 = arith.constant 0 : index
    %44 = vector.load %arg21[%c4_45, %c0_46] : memref<12x128xf32, #tpu.memory_space<vmem>>, vector<8x128xf32>
    %45 = tpu.concatenate %43, %44 in 1 : vector<8x128xf32>, vector<8x128xf32> -> vector<8x256xf32>
    %c0_47 = arith.constant 0 : index
    %c0_48 = arith.constant 0 : index
    %46 = vector.load %arg10[%c0_47, %c0_48] : memref<256x128xf32, #tpu.memory_space<vmem>>, vector<256x128xf32>
    %cst_49 = arith.constant dense<0.000000e+00> : vector<8x128xf32>
    %47 = tpu.matmul %45, %46, %cst_49 {dimension_numbers = #tpu.dot_dimension_numbers<[1], [0], [0], [1], [0, 0, 1, 1], [], []>} : vector<8x256xf32>, vector<256x128xf32>, vector<8x128xf32> -> vector<8x128xf32>
    %c0_50 = arith.constant 0 : index
    %c0_51 = arith.constant 0 : index
    %48 = vector.load %arg11[%c0_50, %c0_51] : memref<1x128xf32, #tpu.memory_space<vmem>>, vector<1x128xf32>
    %49 = vector.broadcast %48 : vector<1x128xf32> to vector<8x128xf32>
    %50 = arith.addf %47, %49 : vector<8x128xf32>
    %cst_52 = arith.constant 0.000000e+00 : f32
    %51 = vector.broadcast %cst_52 : f32 to vector<8x128xf32>
    %52 = arith.maximumf %50, %51 : vector<8x128xf32>
    %c4_53 = arith.constant 4 : index
    %c0_54 = arith.constant 0 : index
    %53 = vector.load %arg22[%c4_53, %c0_54] : memref<12x128xf32, #tpu.memory_space<vmem>>, vector<8x128xf32>
    tpu.vector_store %arg22[%c4_53, %c0_54], %52 {strides = array<i32>} : memref<12x128xf32, #tpu.memory_space<vmem>>, vector<8x128xf32>,
    %c2_55 = arith.constant 2 : index
    %c0_56 = arith.constant 0 : index
    %54 = vector.load %arg22[%c2_55, %c0_56] : memref<12x128xf32, #tpu.memory_space<vmem>>, vector<8x128xf32>
    %c4_57 = arith.constant 4 : index
    %c0_58 = arith.constant 0 : index
    %55 = vector.load %arg22[%c4_57, %c0_58] : memref<12x128xf32, #tpu.memory_space<vmem>>, vector<8x128xf32>
    %56 = tpu.concatenate %54, %55 in 1 : vector<8x128xf32>, vector<8x128xf32> -> vector<8x256xf32>
    %c0_59 = arith.constant 0 : index
    %c0_60 = arith.constant 0 : index
    %57 = vector.load %arg12[%c0_59, %c0_60] : memref<256x128xf32, #tpu.memory_space<vmem>>, vector<256x128xf32>
    %cst_61 = arith.constant dense<0.000000e+00> : vector<8x128xf32>
    %58 = tpu.matmul %56, %57, %cst_61 {dimension_numbers = #tpu.dot_dimension_numbers<[1], [0], [0], [1], [0, 0, 1, 1], [], []>} : vector<8x256xf32>, vector<256x128xf32>, vector<8x128xf32> -> vector<8x128xf32>
    %c0_62 = arith.constant 0 : index
    %c0_63 = arith.constant 0 : index
    %59 = vector.load %arg13[%c0_62, %c0_63] : memref<1x128xf32, #tpu.memory_space<vmem>>, vector<1x128xf32>
    %60 = vector.broadcast %59 : vector<1x128xf32> to vector<8x128xf32>
    %61 = arith.addf %58, %60 : vector<8x128xf32>
    %cst_64 = arith.constant 0.000000e+00 : f32
    %62 = vector.broadcast %cst_64 : f32 to vector<8x128xf32>
    %63 = arith.maximumf %61, %62 : vector<8x128xf32>
    %c4_65 = arith.constant 4 : index
    %c0_66 = arith.constant 0 : index
    %64 = vector.load %arg21[%c4_65, %c0_66] : memref<12x128xf32, #tpu.memory_space<vmem>>, vector<8x128xf32>
    %c0_67 = arith.constant 0 : index
    %c0_68 = arith.constant 0 : index
    %65 = vector.load %arg14[%c0_67, %c0_68] : memref<128x128xf32, #tpu.memory_space<vmem>>, vector<128x128xf32>
    %cst_69 = arith.constant dense<0.000000e+00> : vector<8x128xf32>
    %66 = tpu.matmul %64, %65, %cst_69 {dimension_numbers = #tpu.dot_dimension_numbers<[1], [0], [0], [1], [0, 0, 1, 1], [], []>} : vector<8x128xf32>, vector<128x128xf32>, vector<8x128xf32> -> vector<8x128xf32>
    %c0_70 = arith.constant 0 : index
    %c0_71 = arith.constant 0 : index
    %67 = vector.load %arg15[%c0_70, %c0_71] : memref<1x128xf32, #tpu.memory_space<vmem>>, vector<1x128xf32>
    %68 = vector.broadcast %67 : vector<1x128xf32> to vector<8x128xf32>
    %69 = arith.addf %66, %68 : vector<8x128xf32>
    %70 = arith.addf %63, %69 : vector<8x128xf32>
    %cst_72 = arith.constant 0.000000e+00 : f32
    %71 = vector.broadcast %cst_72 : f32 to vector<8x128xf32>
    %72 = arith.maximumf %70, %71 : vector<8x128xf32>
    %c4_73 = arith.constant 4 : index
    %c0_74 = arith.constant 0 : index
    %73 = vector.load %arg21[%c4_73, %c0_74] : memref<12x128xf32, #tpu.memory_space<vmem>>, vector<8x128xf32>
    tpu.vector_store %arg21[%c4_73, %c0_74], %72 {strides = array<i32>} : memref<12x128xf32, #tpu.memory_space<vmem>>, vector<8x128xf32>,
    %c0_75 = arith.constant 0 : index
    %c0_76 = arith.constant 0 : index
    %74 = vector.load %arg21[%c0_75, %c0_76] : memref<12x128xf32, #tpu.memory_space<vmem>>, vector<8x128xf32>
    %c4_77 = arith.constant 4 : index
    %c0_78 = arith.constant 0 : index
    %75 = vector.load %arg21[%c4_77, %c0_78] : memref<12x128xf32, #tpu.memory_space<vmem>>, vector<8x128xf32>
    %76 = tpu.concatenate %74, %75 in 1 : vector<8x128xf32>, vector<8x128xf32> -> vector<8x256xf32>
    %c0_79 = arith.constant 0 : index
    %c0_80 = arith.constant 0 : index
    %77 = vector.load %arg16[%c0_79, %c0_80] : memref<256x128xf32, #tpu.memory_space<vmem>>, vector<256x128xf32>
    %cst_81 = arith.constant dense<0.000000e+00> : vector<8x128xf32>
    %78 = tpu.matmul %76, %77, %cst_81 {dimension_numbers = #tpu.dot_dimension_numbers<[1], [0], [0], [1], [0, 0, 1, 1], [], []>} : vector<8x256xf32>, vector<256x128xf32>, vector<8x128xf32> -> vector<8x128xf32>
    %c0_82 = arith.constant 0 : index
    %c0_83 = arith.constant 0 : index
    %79 = vector.load %arg17[%c0_82, %c0_83] : memref<1x128xf32, #tpu.memory_space<vmem>>, vector<1x128xf32>
    %80 = vector.broadcast %79 : vector<1x128xf32> to vector<8x128xf32>
    %81 = arith.addf %78, %80 : vector<8x128xf32>
    %cst_84 = arith.constant 0.000000e+00 : f32
    %82 = vector.broadcast %cst_84 : f32 to vector<8x128xf32>
    %83 = arith.maximumf %81, %82 : vector<8x128xf32>
    %c4_85 = arith.constant 4 : index
    %c0_86 = arith.constant 0 : index
    %84 = vector.load %arg22[%c4_85, %c0_86] : memref<12x128xf32, #tpu.memory_space<vmem>>, vector<8x128xf32>
    tpu.vector_store %arg22[%c4_85, %c0_86], %83 {strides = array<i32>} : memref<12x128xf32, #tpu.memory_space<vmem>>, vector<8x128xf32>,
    %c0_87 = arith.constant 0 : index
    %c0_88 = arith.constant 0 : index
    %85 = vector.load %arg22[%c0_87, %c0_88] : memref<12x128xf32, #tpu.memory_space<vmem>>, vector<8x128xf32>
    %c4_89 = arith.constant 4 : index
    %c0_90 = arith.constant 0 : index
    %86 = vector.load %arg22[%c4_89, %c0_90] : memref<12x128xf32, #tpu.memory_space<vmem>>, vector<8x128xf32>
    %87 = tpu.concatenate %85, %86 in 1 : vector<8x128xf32>, vector<8x128xf32> -> vector<8x256xf32>
    %c0_91 = arith.constant 0 : index
    %c0_92 = arith.constant 0 : index
    %88 = vector.load %arg18[%c0_91, %c0_92] : memref<256x128xf32, #tpu.memory_space<vmem>>, vector<256x128xf32>
    %cst_93 = arith.constant dense<0.000000e+00> : vector<8x128xf32>
    %89 = tpu.matmul %87, %88, %cst_93 {dimension_numbers = #tpu.dot_dimension_numbers<[1], [0], [0], [1], [0, 0, 1, 1], [], []>} : vector<8x256xf32>, vector<256x128xf32>, vector<8x128xf32> -> vector<8x128xf32>
    %c0_94 = arith.constant 0 : index
    %c0_95 = arith.constant 0 : index
    %90 = vector.load %arg19[%c0_94, %c0_95] : memref<1x128xf32, #tpu.memory_space<vmem>>, vector<1x128xf32>
    %91 = vector.broadcast %90 : vector<1x128xf32> to vector<8x128xf32>
    %92 = arith.addf %89, %91 : vector<8x128xf32>
    %cst_96 = arith.constant 0.000000e+00 : f32
    %93 = vector.broadcast %cst_96 : f32 to vector<8x128xf32>
    %94 = arith.maximumf %92, %93 : vector<8x128xf32>
    %c4_97 = arith.constant 4 : index
    %c0_98 = arith.constant 0 : index
    %95 = vector.load %arg21[%c4_97, %c0_98] : memref<12x128xf32, #tpu.memory_space<vmem>>, vector<8x128xf32>
    %96 = arith.addf %94, %95 : vector<8x128xf32>
    %cst_99 = arith.constant 0.000000e+00 : f32
    %97 = vector.broadcast %cst_99 : f32 to vector<8x128xf32>
    %98 = arith.maximumf %96, %97 : vector<8x128xf32>
    %c0_100 = arith.constant 0 : index
    %c0_101 = arith.constant 0 : index
    %c0_102 = arith.constant 0 : index
    %99 = vector.load %arg20[%c0_100, %c0_101, %c0_102] : memref<1x8x128xf32, #tpu.memory_space<vmem>>, vector<1x8x128xf32>
    %100 = vector.shape_cast %99 : vector<1x8x128xf32> to vector<8x128xf32>
    %101 = vector.shape_cast %98 : vector<8x128xf32> to vector<1x8x128xf32>
    tpu.vector_store %arg20[%c0_100, %c0_101, %c0_102], %101 {strides = array<i32>} : memref<1x8x128xf32, #tpu.memory_space<vmem>>, vector<1x8x128xf32>,
    return
  }
  func.func @transform_0(%arg0: i32) -> (i32, i32, i32) {
    %c0_i32 = arith.constant 0 : i32
    %c0_i32_0 = arith.constant 0 : i32
    %c0_i32_1 = arith.constant 0 : i32
    return %arg0, %c0_i32, %c0_i32_0 : i32, i32, i32
  }
  func.func @transform_1(%arg0: i32) -> (i32, i32) {
    %c0_i32 = arith.constant 0 : i32
    %c0_i32_0 = arith.constant 0 : i32
    %c0_i32_1 = arith.constant 0 : i32
    return %c0_i32, %c0_i32_0 : i32, i32
  }
  func.func @transform_2(%arg0: i32) -> (i32, i32) {
    %c0_i32 = arith.constant 0 : i32
    %c0_i32_0 = arith.constant 0 : i32
    %c0_i32_1 = arith.constant 0 : i32
    return %c0_i32, %c0_i32_0 : i32, i32
  }
  func.func @transform_3(%arg0: i32) -> (i32, i32) {
    %c0_i32 = arith.constant 0 : i32
    %c0_i32_0 = arith.constant 0 : i32
    %c0_i32_1 = arith.constant 0 : i32
    return %c0_i32, %c0_i32_0 : i32, i32
  }
  func.func @transform_4(%arg0: i32) -> (i32, i32) {
    %c0_i32 = arith.constant 0 : i32
    %c0_i32_0 = arith.constant 0 : i32
    %c0_i32_1 = arith.constant 0 : i32
    return %c0_i32, %c0_i32_0 : i32, i32
  }
  func.func @transform_5(%arg0: i32) -> (i32, i32) {
    %c0_i32 = arith.constant 0 : i32
    %c0_i32_0 = arith.constant 0 : i32
    %c0_i32_1 = arith.constant 0 : i32
    return %c0_i32, %c0_i32_0 : i32, i32
  }
  func.func @transform_6(%arg0: i32) -> (i32, i32) {
    %c0_i32 = arith.constant 0 : i32
    %c0_i32_0 = arith.constant 0 : i32
    %c0_i32_1 = arith.constant 0 : i32
    return %c0_i32, %c0_i32_0 : i32, i32
  }
  func.func @transform_7(%arg0: i32) -> (i32, i32) {
    %c0_i32 = arith.constant 0 : i32
    %c0_i32_0 = arith.constant 0 : i32
    %c0_i32_1 = arith.constant 0 : i32
    return %c0_i32, %c0_i32_0 : i32, i32
  }
  func.func @transform_8(%arg0: i32) -> (i32, i32) {
    %c0_i32 = arith.constant 0 : i32
    %c0_i32_0 = arith.constant 0 : i32
    %c0_i32_1 = arith.constant 0 : i32
    return %c0_i32, %c0_i32_0 : i32, i32
  }
  func.func @transform_9(%arg0: i32) -> (i32, i32) {
    %c0_i32 = arith.constant 0 : i32
    %c0_i32_0 = arith.constant 0 : i32
    %c0_i32_1 = arith.constant 0 : i32
    return %c0_i32, %c0_i32_0 : i32, i32
  }
  func.func @transform_10(%arg0: i32) -> (i32, i32) {
    %c0_i32 = arith.constant 0 : i32
    %c0_i32_0 = arith.constant 0 : i32
    %c0_i32_1 = arith.constant 0 : i32
    return %c0_i32, %c0_i32_0 : i32, i32
  }
  func.func @transform_11(%arg0: i32) -> (i32, i32) {
    %c0_i32 = arith.constant 0 : i32
    %c0_i32_0 = arith.constant 0 : i32
    %c0_i32_1 = arith.constant 0 : i32
    return %c0_i32, %c0_i32_0 : i32, i32
  }
  func.func @transform_12(%arg0: i32) -> (i32, i32) {
    %c0_i32 = arith.constant 0 : i32
    %c0_i32_0 = arith.constant 0 : i32
    %c0_i32_1 = arith.constant 0 : i32
    return %c0_i32, %c0_i32_0 : i32, i32
  }
  func.func @transform_13(%arg0: i32) -> (i32, i32) {
    %c0_i32 = arith.constant 0 : i32
    %c0_i32_0 = arith.constant 0 : i32
    %c0_i32_1 = arith.constant 0 : i32
    return %c0_i32, %c0_i32_0 : i32, i32
  }
  func.func @transform_14(%arg0: i32) -> (i32, i32) {
    %c0_i32 = arith.constant 0 : i32
    %c0_i32_0 = arith.constant 0 : i32
    %c0_i32_1 = arith.constant 0 : i32
    return %c0_i32, %c0_i32_0 : i32, i32
  }
  func.func @transform_15(%arg0: i32) -> (i32, i32) {
    %c0_i32 = arith.constant 0 : i32
    %c0_i32_0 = arith.constant 0 : i32
    %c0_i32_1 = arith.constant 0 : i32
    return %c0_i32, %c0_i32_0 : i32, i32
  }
  func.func @transform_16(%arg0: i32) -> (i32, i32) {
    %c0_i32 = arith.constant 0 : i32
    %c0_i32_0 = arith.constant 0 : i32
    %c0_i32_1 = arith.constant 0 : i32
    return %c0_i32, %c0_i32_0 : i32, i32
  }
  func.func @transform_17(%arg0: i32) -> (i32, i32) {
    %c0_i32 = arith.constant 0 : i32
    %c0_i32_0 = arith.constant 0 : i32
    %c0_i32_1 = arith.constant 0 : i32
    return %c0_i32, %c0_i32_0 : i32, i32
  }
  func.func @transform_18(%arg0: i32) -> (i32, i32) {
    %c0_i32 = arith.constant 0 : i32
    %c0_i32_0 = arith.constant 0 : i32
    %c0_i32_1 = arith.constant 0 : i32
    return %c0_i32, %c0_i32_0 : i32, i32
  }
  func.func @transform_19(%arg0: i32) -> (i32, i32, i32) {
    %c0_i32 = arith.constant 0 : i32
    %c0_i32_0 = arith.constant 0 : i32
    %c0_i32_1 = arith.constant 0 : i32
    return %arg0, %c0_i32, %c0_i32_0 : i32, i32, i32
  }
}

</mosaic_0001>

<bundles_post_ra>
// kernel: tpu_custom_call.1
= control target key start
LH: loop header
LB: loop body
LE: loop exit
PB: predicated region body
PF: predicated region fallthrough
CT: control target
= control target key end

     0   :  { %s2491_s0 = inlined_call_operand.hbm [shape: f32[2,8,20], index: 0, kind: input, shape index: {}]   ;;  %s2492_s1 = inlined_call_operand.hbm [shape: f32[20,128], index: 1, kind: input, shape index: {}]   ;;  %s2493_s2 = inlined_call_operand.vmem [shape: f32[1,128], index: 2, kind: input, shape index: {}]   ;;  %s2494_s3 = inlined_call_operand.hbm [shape: f32[256,128], index: 3, kind: input, shape index: {}]   ;;  %s2495_s4 = inlined_call_operand.vmem [shape: f32[1,128], index: 4, kind: input, shape index: {}]   ;;  %s2496_s5 = inlined_call_operand.hbm [shape: f32[256,128], index: 5, kind: input, shape index: {}]   ;;  %s2497_s6 = inlined_call_operand.vmem [shape: f32[1,128], index: 6, kind: input, shape index: {}]   ;;  %s2498_s7 = inlined_call_operand.hbm [shape: f32[128,128], index: 7, kind: input, shape index: {}]   ;;  %s2499_s8 = inlined_call_operand.vmem [shape: f32[1,128], index: 8, kind: input, shape index: {}]   ;;  %s2500_s9 = inlined_call_operand.hbm [shape: f32[256,128], index: 9, kind: input, shape index: {}]   ;;  %s2501_s10 = inlined_call_operand.vmem [shape: f32[1,128], index: 10, kind: input, shape index: {}]   ;;  %s2502_s11 = inlined_call_operand.hbm [shape: f32[256,128], index: 11, kind: input, shape index: {}]   ;;  %s2503_s12 = inlined_call_operand.vmem [shape: f32[1,128], index: 12, kind: input, shape index: {}]   ;;  %s2504_s13 = inlined_call_operand.hbm [shape: f32[128,128], index: 13, kind: input, shape index: {}]   ;;  %s2505_s14 = inlined_call_operand.vmem [shape: f32[1,128], index: 14, kind: input, shape index: {}]   ;;  %s2506_s15 = inlined_call_operand.hbm [shape: f32[256,128], index: 15, kind: input, shape index: {}]   ;;  %s2507_s16 = inlined_call_operand.vmem [shape: f32[1,128], index: 16, kind: input, shape index: {}]   ;;  %s2508_s17 = inlined_call_operand.hbm [shape: f32[256,128], index: 17, kind: input, shape index: {}]   ;;  %s2509_s18 = inlined_call_operand.vmem [shape: f32[1,128], index: 18, kind: input, shape index: {}]   ;;  %s2510_s19 = inlined_call_operand.hbm [shape: f32[2,8,128], index: 19, kind: output, shape index: {}]  }
   0x1   :  { %2513 = sst [smem:[#allocation29_spill]] %s2491_s0 }
   0x2   :  { %2514 = sst [smem:[#allocation30_spill]] %s2492_s1 }
   0x3   :  { %2515 = sst [smem:[#allocation31_spill]] %s2493_s2 }
   0x4   :  { %2516 = sst [smem:[#allocation32_spill]] %s2494_s3 }
   0x5   :  { %2517 = sst [smem:[#allocation33_spill]] %s2496_s5 }
   0x6   :  { %2518 = sst [smem:[#allocation34_spill]] %s2498_s7 }
   0x7   :  { %2519 = sst [smem:[#allocation35_spill]] %s2500_s9 }
   0x8   :  { %2520 = sst [smem:[#allocation36_spill]] %s2502_s11 }
   0x9   :  { %2521 = sst [smem:[#allocation37_spill]] %s2503_s12 }
   0xa   :  { %2522 = sst [smem:[#allocation38_spill]] %s2504_s13 }
   0xb   :  { %2523 = sst [smem:[#allocation39_spill]] %s2505_s14 }
   0xc   :  { %2524 = sst [smem:[#allocation40_spill]] %s2507_s16 }
   0xd   :  { %2525 = sst [smem:[#allocation41_spill]] %s2509_s18 }
   0xe   :  { %2526 = sst [smem:[#allocation42_spill]] %s2510_s19 }
   0xf   :  { %24 = vsyncpa [#allocation5], 0 }
  0x10   :  { %26 = vsyncpa [#allocation5 + $0x1], 0 }
  0x11   :  { %27 = vsyncpa [#allocation8], 0 }
  0x12   :  { %28 = vsyncpa [#allocation11], 0 }
  0x13   :  { %29 = vsyncpa [#allocation14], 0 }
  0x14   :  { %30 = vsyncpa [#allocation17], 0 }
  0x15   :  { %31 = vsyncpa [#allocation20], 0 }
  0x16   :  { %32 = vsyncpa [#allocation6], 0 }
  0x17   :  { %34 = vsyncpa [#allocation6 + $0x1], 0  ;;  %s2230_s0 = smov 0   ;;  %s2232_s30 = smov 0  }
  0x18   :  { %s2234_s20 = smov 0   ;;  %s2236_s21 = smov 0  }
  0x19 LB: > { %s2527_s2 = sld [smem:[#allocation30_spill]]  ;;  %s2254_s24 = sadd.s32 4294967295, %s2116_s21   ;;  %s2116_s21 = sphi %s2236_s21, %s2551_s21   ;;  %s2112_s20 = sphi %s2234_s20, %s2550_s20   ;;  %s2108_s30 = sphi %s2232_s30, %s2549_s30   ;;  %s2104_s0 = sphi %s2230_s0, %s2548_s0  }
  0x1a   : > { %p1550_p0 = scmp.ge.s32.totalorder %s2116_s21, 1  ;;  %p61_p1 = scmp.eq.s32.totalorder %s2254_s24, 0 }
  0x1b   : > { %p475_p2 = scmp.lt.s32.totalorder %s2116_s21, 3  ;;  %s2118_s3 = smov [#allocation7]  }
  0x1c   : > { %s488_s26 = sshll.u32 %s2118_s3, 4  ;;  %s2529_s5 = sld [smem:[#allocation33_spill]]  ;;  %s489_s26 = int_to_ptr.vmem [resolvable:$true] %s488_s26 }
  0x1d   : > { %p2259_p3 = pnand %p1550_p0, %p475_p2  ;;  %s2531_s9 = sld [smem:[#allocation35_spill]] }
  0x1e   : > { %s2119_s19 = smov [#allocation10]   ;;  %s2120_s16 = smov 128  }
  0x1f   : > { %s486_s23 = sshll.u32 %s2527_s2, 4  ;;  %p1621_p4 = pneg %p2259_p3  ;;  %s487_s23 = int_to_ptr.hbm [resolvable:$true] %s486_s23 }
  0x20   : > { %s522_s18 = sshll.u32 %s2119_s19, 4  ;;  %s2121_s14 = smov 8   ;;  %s523_s18 = int_to_ptr.vmem [resolvable:$true] %s522_s18 }
  0x21   : > { %p2271_p6 = pnand %p1621_p4, %p61_p1  ;;  %s2532_s13 = sld [smem:[#allocation38_spill]] }
  0x22   : > { %s520_s29 = sshll.u32 %s2529_s5, 4  ;;  %s2122_s19 = smov [#allocation13]   ;;  %s521_s29 = int_to_ptr.hbm [resolvable:$true] %s520_s29 }
  0x23   : > { %s554_s3 = sshll.u32 %s2531_s9, 4  ;;  %s556_s2 = sshll.u32 %s2122_s19, 4  ;;  %s555_s3 = int_to_ptr.hbm [resolvable:$true] %s554_s3  ;;  %s557_s2 = int_to_ptr.vmem [resolvable:$true] %s556_s2 }
  0x24   : > { %1624 = dma.hbm_to_vmem [thread:$0]  (!%p2271_p6), %s487_s23, 384, %s489_s26, [#allocation8], %s2120_s16, %s2120_s16, %s2121_s14  }
  0x25   : > { %1630 = dma.hbm_to_vmem [thread:$0]  (!%p2271_p6), %s521_s29, 4096, %s523_s18, [#allocation11], %s2120_s16, %s2120_s16, %s2121_s14  }
  0x26   : > { %1636 = dma.hbm_to_vmem [thread:$0]  (!%p2271_p6), %s555_s3, 4096, %s557_s2, [#allocation14], %s2120_s16, %s2120_s16, %s2121_s14  }
  0x27   : > { %s588_s22 = sshll.u32 %s2532_s13, 4  ;;  %s2123_s23 = smov [#allocation16]   ;;  %s589_s22 = int_to_ptr.hbm [resolvable:$true] %s588_s22 }
  0x28   : > { %s590_s26 = sshll.u32 %s2123_s23, 4  ;;  %s2533_s12 = sld [smem:[#allocation32_spill]]  ;;  %s591_s26 = int_to_ptr.vmem [resolvable:$true] %s590_s26 }
  0x29   : > { %1642 = dma.hbm_to_vmem [thread:$0]  (!%p2271_p6), %s589_s22, 2048, %s591_s26, [#allocation17], %s2120_s16, %s2120_s16, %s2121_s14  }
  0x2a   : > { %s2534_s7 = sld [smem:[#allocation34_spill]]  ;;  %s2124_s19 = smov [#allocation9]  }
  0x2b   : > { %s505_s3 = sshll.u32 %s2124_s19, 4  ;;  %s2125_s5 = smov [#allocation12]   ;;  %s506_s3 = int_to_ptr.vmem [resolvable:$true] %s505_s3 }
  0x2c   : > { %s539_s9 = sshll.u32 %s2125_s5, 4  ;;  %s2535_s11 = sld [smem:[#allocation36_spill]]  ;;  %s540_s9 = int_to_ptr.vmem [resolvable:$true] %s539_s9 }
  0x2d   : > { %s605_s29 = sshll.u32 %s2506_s15, 4  ;;  %s2343_s23 = sadd.s32 1, %s2116_s21   ;;  %s606_s29 = int_to_ptr.hbm [resolvable:$true] %s605_s29 }
  0x2e   : > { %s503_s18 = sshll.u32 %s2533_s12, 4  ;;  %s2128_s12 = smov [#allocation19]   ;;  %s504_s18 = int_to_ptr.hbm [resolvable:$true] %s503_s18 }
  0x2f   : > { %1627 = dma.hbm_to_vmem [thread:$0]  (!%p2271_p6), %s504_s18, 4096, %s506_s3, [#allocation8], %s2120_s16, %s2120_s16, %s2121_s14  }
  0x30   : > { %s537_s28 = sshll.u32 %s2534_s7, 4  ;;  %s2126_s18 = smov [#allocation15]   ;;  %s538_s28 = int_to_ptr.hbm [resolvable:$true] %s537_s28 }
  0x31   : > { %1633 = dma.hbm_to_vmem [thread:$0]  (!%p2271_p6), %s538_s28, 2048, %s540_s9, [#allocation11], %s2120_s16, %s2120_s16, %s2121_s14  }
  0x32   : > { %s571_s22 = sshll.u32 %s2535_s11, 4  ;;  %s573_s27 = sshll.u32 %s2126_s18, 4  ;;  %s572_s22 = int_to_ptr.hbm [resolvable:$true] %s571_s22  ;;  %s574_s27 = int_to_ptr.vmem [resolvable:$true] %s573_s27 }
  0x33   : > { %1639 = dma.hbm_to_vmem [thread:$0]  (!%p2271_p6), %s572_s22, 4096, %s574_s27, [#allocation14], %s2120_s16, %s2120_s16, %s2121_s14  }
  0x34   : > { %s2127_s28 = smov [#allocation18]   ;;  %s622_s9 = sshll.u32 %s2508_s17, 4  ;;  %s623_s9 = int_to_ptr.hbm [resolvable:$true] %s622_s9 }
  0x35   : > { %s607_s19 = sshll.u32 %s2127_s28, 4  ;;  %s624_s2 = sshll.u32 %s2128_s12, 4  ;;  %s608_s19 = int_to_ptr.vmem [resolvable:$true] %s607_s19  ;;  %s625_s2 = int_to_ptr.vmem [resolvable:$true] %s624_s2 }
  0x36   : > { %1645 = dma.hbm_to_vmem [thread:$0]  (!%p2271_p6), %s606_s29, 4096, %s608_s19, [#allocation17], %s2120_s16, %s2120_s16, %s2121_s14  }
  0x37   : > { %1648 = dma.hbm_to_vmem [thread:$0]  (!%p2271_p6), %s623_s9, 4096, %s625_s2, [#allocation20], %s2120_s16, %s2120_s16, %s2121_s14  }
  0x38   : > { %s1549_s22 = sadd.s32 4294967294, %s2116_s21   ;;  %s47_s26 = sadd.s32 1, %s2112_s20 }
  0x39   : > { %s44_s18 = ssub.s32 %s2116_s21, %s2343_s23  ;;  %p54_p7 = scmp.ne.s32.totalorder %s2112_s20, %s2108_s30 }
  0x3a   : > { %p45_p8 = scmp.eq.s32.totalorder %s44_s18, 0  ;;  %p55_p9 = scmp.eq.s32.totalorder %s2116_s21, 0 }
  0x3b   : > { %p60_p10 = scmp.ne.s32.totalorder %s2108_s30, %s2104_s0  ;;  %p462_p11 = scmp.eq.s32.totalorder %s2254_s24, 1 }
  0x3c   : > { %s2355_s29 = scalar_select %p45_p8, %s2112_s20, %s47_s26  }
  0x3d   : > { %p2359_p12 = por %p61_p1, %p60_p10  ;;  %p2363_p13 = por %p462_p11, %p54_p7 }
  0x3e   : > { %p468_p0 = scmp.eq.s32.totalorder %s1549_s22, 1  ;;  %p56_p2 = por %p55_p9, %p54_p7 }
  0x3f   : > { %s641_s16 = sand.u32 1, %s2112_s20   ;;  %p1666_p6 = scmp.lt.s32.totalorder %s2116_s21, 2 }
  0x40   : > { %p2368_p4 = por %p468_p0, %p60_p10  ;;  %s1561_s28 = sshll.u32 %s641_s16, 3 }
  0x41   : > { %s1562_s19 = sshll.u32 %s2116_s21, 3  ;;  %s2539_s9 = sld [smem:[#allocation29_spill]] }
  0x42   : > { %s645_s26 = scalar_lea.vmem [#allocation4], %s1561_s28  ;;  %p2377_p8 = pnand %p1666_p6, %p56_p2 }
  0x43   : > { %s653_s18 = sshll.u32 %s645_s26, 4  ;;  %s642_s7 = scalar_lea.sflag [#allocation5], %s641_s16  ;;  %s654_s18 = int_to_ptr.vmem [resolvable:$true] %s653_s18 }
  0x44   : > { %p2004_p9 = pneg %p2377_p8 }
  0x47   : > { %s649_s12 = scalar_lea.hbm %s2539_s9, %s1562_s19  ;;  %s2007_s28 = scalar_lea.hbm %s2539_s9, 16 }
  0x48   : > { %s651_s2 = sshll.u32 %s649_s12, 4  ;;  %s652_s2 = int_to_ptr.hbm [resolvable:$true] %s651_s2 }
  0x49   : > { %s2000_s11 = sshra.s32 %s652_s2, 4  ;;  %s2001_s11 = int_to_ptr.hbm [resolvable:$true] %s2000_s11 }
  0x4a   : > { %s2002_s13 = scalar_lea.hbm %s2001_s11, 8  ;;  %p2008_p0 = scmp.lt.s32.totalorder %s2001_s11, %s2539_s9 }
  0x4b   : > { %p2003_p7 = scmp.ne.s32.totalorder %s2001_s11, %s2002_s13  ;;  %p2009_p2 = scmp.lt.s32.totalorder %s2007_s28, %s2002_s13 }
  0x4d   : > { %p2005_p10 = pnand %p2004_p9, %p2003_p7  ;;  %p2010_p6 = por %p2009_p2, %p2008_p0 }
  0x4f   : > { %p2006_p11 = pneg %p2005_p10 }
  0x51   : > { %p2011_p5 = pnand %p2010_p6, %p2006_p11 }
  0x53   : > { %2014 = shalt.err (!%p2011_p5)
}
  0x54   : > { %1652 = dma.hbm_to_vmem [thread:$0]  (!%p2377_p8), %s652_s2, 128, %s654_s18, %s642_s7  }
  0x55   : > { %662 = sbr.rel (%p2259_p3) target bundleno = 1108 (0x454), region = 96  ;;  %s2394_s16 = sand.u32 (!%p2259_p3), 1, %s2108_s30  }
  0x56   : > { %s1564_s26 = sshll.u32 (!%p2259_p3), %s2394_s16, 3  ;;  %s665_s19 = scalar_lea.sflag (!%p2259_p3), [#allocation5], %s2394_s16 }
  0x57   : > { %s668_s11 = scalar_lea.vmem (!%p2259_p3), [#allocation4], %s1564_s26 }
  0x5a   : > { %2075 = dma.done.wait (%p2359_p12), %s665_s19, 128  }
  0x5b   : > { %2077 = vsyncadd (%p2359_p12), %s665_s19, 4294967168 }
  0x5c   : > { %2079 = dma.done.wait (%p61_p1), [#allocation8], 4480  }
  0x5d   : > { %2081 = vsyncadd (%p61_p1), [#allocation8], 4294962816 }
  0x5e   : > { %2083 = dma.done.wait (%p61_p1), [#allocation11], 6144  }
  0x5f   : > { %2085 = vsyncadd (%p61_p1), [#allocation11], 4294961152 }
  0x60   : > { %2087 = dma.done.wait (%p61_p1), [#allocation14], 8192  }
  0x61   : > { %2089 = vsyncadd (%p61_p1), [#allocation14], 4294959104 }
  0x62   : > { %2091 = dma.done.wait (%p61_p1), [#allocation17], 6144  }
  0x63   : > { %2093 = vsyncadd (%p61_p1), [#allocation17], 4294961152 }
  0x64   : > { %2095 = dma.done.wait (%p61_p1), [#allocation20], 4096  }
  0x65   : > { %2097 = vsyncadd (%p61_p1), [#allocation20], 4294963200  ;;  %vm783_vm0 = vcmask 1043456   ;;  %v774_v0 = vld [vmem:[#allocation7 + $0x10] sm:$0xf]  ;;  %v773_v1 = vld [vmem:[#allocation7 + $0x8] sm:$0xff] }
  0x66   : > { %1575 = vmatpush.msk.msra.mxu0 %vm783_vm0, %v774_v0  ;;  %v825_v2 = vld [vmem:[#allocation9 + $0x78] sm:$0xff]  ;;  %v824_v3 = vld [vmem:[#allocation9 + $0x70] sm:$0xff]  ;;  %v772_v4 = vld [vmem:[#allocation7] sm:$0xff]  ;;  %vm779_vm1 = vcmask 162816   ;;  %v2129_v46 = vmov 0.0   ;;  %s2541_s25 = sld [smem:[#allocation31_spill]] }
  0x67   : > { %846 = vmatpush.msra.mxu1 %v825_v2  ;;  %v771_v5 = vld [vmem:[%s668_s11] sm:$0xff]  ;;  %v823_v6 = vld [vmem:[#allocation9 + $0x68] sm:$0xff]  ;;  %v840_v9 = vld [vmem:[#allocation9 + $0xf0] sm:$0xff]  ;;  %769 = vst [vmem:[#allocation2] sm:$0xf] %v2129_v46  ;;  %s2542_s7 = sld [smem:[#allocation37_spill]] }
  0x68   : > { %801 = vmatpush.msra.mxu0 %v773_v1  ;;  %v822_v7 = vld [vmem:[#allocation9 + $0x60] sm:$0xff]  ;;  %v841_v8 = vld [vmem:[#allocation9 + $0xf8] sm:$0xff]  ;;  %v839_v11 = vld [vmem:[#allocation9 + $0xe8] sm:$0xff]  ;;  %770 = vst [vmem:[#allocation3] sm:$0xf] %v2129_v46  ;;  %s2543_s1 = sld [smem:[#allocation39_spill]] }
  0x69   : > { %847 = vmatpush.msra.mxu1 %v824_v3  ;;  %v821_v10 = vld [vmem:[#allocation9 + $0x58] sm:$0xff]  ;;  %866 = vmatpush.msra.mxu2 %v841_v8  ;;  %v820_v12 = vld [vmem:[#allocation9 + $0x50] sm:$0xff]  ;;  %v838_v13 = vld [vmem:[#allocation9 + $0xe0] sm:$0xff]  ;;  %s2544_s22 = sld [smem:[#allocation40_spill]]  ;;  %s1578_s12 = sshll.u32 %s2254_s24, 3 }
  0x6a   : > { %802 = vmatpush.msra.mxu0 %v772_v4  ;;  %v819_v14 = vld [vmem:[#allocation9 + $0x48] sm:$0xff]  ;;  %v818_v15 = vld [vmem:[#allocation9 + $0x40] sm:$0xff]  ;;  %v837_v16 = vld [vmem:[#allocation9 + $0xd8] sm:$0xff]  ;;  %s2545_s5 = sld [smem:[#allocation41_spill]]  ;;  %s1378_s24 = scalar_lea.sflag [#allocation6], %s2394_s16 }
  0x6b   : > { %1576 = vmatmul.msk.f32.vlgmr.msra.gmra.mxu0 %vm779_vm1, %v771_v5  ;;  %848 = vmatpush.msra.mxu1 %v823_v6  ;;  %v836_v17 = vld [vmem:[#allocation9 + $0xd0] sm:$0xff]  ;;  %v817_v18 = vld [vmem:[#allocation9 + $0x38] sm:$0xff]  ;;  %v835_v19 = vld [vmem:[#allocation9 + $0xc8] sm:$0xff] }
  0x6c   : > { %867 = vmatpush.msra.mxu2 %v840_v9  ;;  %v816_v20 = vld [vmem:[#allocation9 + $0x30] sm:$0xff]  ;;  %v834_v21 = vld [vmem:[#allocation9 + $0xc0] sm:$0xff]  ;;  %v815_v22 = vld [vmem:[#allocation9 + $0x28] sm:$0xff] }
  0x6d   : > { %849 = vmatpush.msra.mxu1 %v822_v7  ;;  %v833_v23 = vld [vmem:[#allocation9 + $0xb8] sm:$0xff]  ;;  %v814_v24 = vld [vmem:[#allocation9 + $0x20] sm:$0xff]  ;;  %v832_v25 = vld [vmem:[#allocation9 + $0xb0] sm:$0xff] }
  0x6e   : > { %868 = vmatpush.msra.mxu2 %v839_v11  ;;  %v813_v26 = vld [vmem:[#allocation9 + $0x18] sm:$0xff]  ;;  %v812_v27 = vld [vmem:[#allocation9 + $0x10] sm:$0xff]  ;;  %v811_v28 = vld [vmem:[#allocation9 + $0x8] sm:$0xff] }
  0x6f   : > { %850 = vmatpush.msra.mxu1 %v821_v10  ;;  %v810_v29 = vld [vmem:[#allocation9] sm:$0xff]  ;;  %v983_v30 = vld [vmem:[#allocation12 + $0x78] sm:$0xff]  ;;  %v982_v31 = vld [vmem:[#allocation12 + $0x70] sm:$0xff] }
  0x70   : > { %869 = vmatpush.msra.mxu2 %v838_v13  ;;  %v981_v32 = vld [vmem:[#allocation12 + $0x68] sm:$0xff]  ;;  %v980_v33 = vld [vmem:[#allocation12 + $0x60] sm:$0xff]  ;;  %v979_v34 = vld [vmem:[#allocation12 + $0x58] sm:$0xff] }
  0x71   : > { %851 = vmatpush.msra.mxu1 %v820_v12  ;;  %v978_v35 = vld [vmem:[#allocation12 + $0x50] sm:$0xff]  ;;  %v831_v36 = vld [vmem:[#allocation9 + $0xa8] sm:$0xff]  ;;  %v830_v37 = vld [vmem:[#allocation9 + $0xa0] sm:$0xff] }
  0x72   : > { %870 = vmatpush.msra.mxu2 %v837_v16  ;;  %v829_v38 = vld [vmem:[#allocation9 + $0x98] sm:$0xff]  ;;  %v828_v39 = vld [vmem:[#allocation9 + $0x90] sm:$0xff]  ;;  %v977_v40 = vld [vmem:[#allocation12 + $0x48] sm:$0xff] }
  0x73   : > { %852 = vmatpush.msra.mxu1 %v819_v14  ;;  %v827_v41 = vld [vmem:[#allocation9 + $0x88] sm:$0xff]  ;;  %v976_v42 = vld [vmem:[#allocation12 + $0x40] sm:$0xff]  ;;  %v975_v44 = vld [vmem:[#allocation12 + $0x38] sm:$0xff] }
  0x74   : > { %871 = vmatpush.msra.mxu2 %v836_v17  ;;  %v826_v43 = vld [vmem:[#allocation9 + $0x80] sm:$0xff]  ;;  %v974_v45 = vld [vmem:[#allocation12 + $0x30] sm:$0xff]  ;;  %v973_v47 = vld [vmem:[#allocation12 + $0x28] sm:$0xff] }
  0x75   : > { %853 = vmatpush.msra.mxu1 %v818_v15  ;;  %v972_v48 = vld [vmem:[#allocation12 + $0x20] sm:$0xff]  ;;  %v971_v49 = vld [vmem:[#allocation12 + $0x18] sm:$0xff]  ;;  %v970_v50 = vld [vmem:[#allocation12 + $0x10] sm:$0xff] }
  0x76   : > { %872 = vmatpush.msra.mxu2 %v835_v19  ;;  %v969_v51 = vld [vmem:[#allocation12 + $0x8] sm:$0xff]  ;;  %v968_v52 = vld [vmem:[#allocation12] sm:$0xff]  ;;  %v905_v53 = vld [vmem:[#allocation10 + $0x78] sm:$0xff] }
  0x77   : > { %854 = vmatpush.msra.mxu1 %v817_v18  ;;  %v921_v54 = vld [vmem:[#allocation10 + $0xf8] sm:$0xff]  ;;  %v904_v55 = vld [vmem:[#allocation10 + $0x70] sm:$0xff]  ;;  %926 = vmatpush.msra.mxu3 %v905_v53  ;;  %v903_v57 = vld [vmem:[#allocation10 + $0x68] sm:$0xff] }
  0x78   : > { %873 = vmatpush.msra.mxu2 %v834_v21  ;;  %946 = vmatpush.msrb.mxu0 %v921_v54  ;;  %v920_v56 = vld [vmem:[#allocation10 + $0xf0] sm:$0xff]  ;;  %v919_v58 = vld [vmem:[#allocation10 + $0xe8] sm:$0xff]  ;;  %v902_v59 = vld [vmem:[#allocation10 + $0x60] sm:$0xff] }
  0x79   : > { %855 = vmatpush.msra.mxu1 %v816_v20  ;;  %927 = vmatpush.msra.mxu3 %v904_v55  ;;  %v918_v60 = vld [vmem:[#allocation10 + $0xe0] sm:$0xff]  ;;  %v901_v61 = vld [vmem:[#allocation10 + $0x58] sm:$0xff]  ;;  %v900_v63 = vld [vmem:[#allocation10 + $0x50] sm:$0xff] }
  0x7a   : > { %874 = vmatpush.msra.mxu2 %v833_v23  ;;  %947 = vmatpush.msrb.mxu0 %v920_v56  ;;  %v917_v62 = vld [vmem:[#allocation10 + $0xd8] sm:$0xff]  ;;  %v916_v0 = vld [vmem:[#allocation10 + $0xd0] sm:$0xff]  ;;  %v915_v5 = vld [vmem:[#allocation10 + $0xc8] sm:$0xff] }
  0x7b   : > { %856 = vmatpush.msra.mxu1 %v815_v22  ;;  %928 = vmatpush.msra.mxu3 %v903_v57  ;;  %v1721_v1 = vld [vmem:[%s2541_s25] ss:$0 sm:$0xff]  ;;  %v914_v6 = vld [vmem:[#allocation10 + $0xc0] sm:$0xff]  ;;  %v912_v8 = vld [vmem:[#allocation10 + $0xb0] sm:$0xff]  ;;  %s768_s25 = scalar_lea.vmem [#allocation21], %s1564_s26 }
  0x7c   : > { %875 = vmatpush.msra.mxu2 %v832_v25  ;;  %948 = vmatpush.msrb.mxu0 %v919_v58  ;;  %v913_v7 = vld [vmem:[#allocation10 + $0xb8] sm:$0xff]  ;;  %v899_v9 = vld [vmem:[#allocation10 + $0x48] sm:$0xff]  ;;  %v898_v11 = vld [vmem:[#allocation10 + $0x40] sm:$0xff] }
  0x7d   : > { %857 = vmatpush.msra.mxu1 %v814_v24  ;;  %929 = vmatpush.msra.mxu3 %v902_v59  ;;  %v911_v10 = vld [vmem:[#allocation10 + $0xa8] sm:$0xff]  ;;  %v910_v12 = vld [vmem:[#allocation10 + $0xa0] sm:$0xff]  ;;  %v897_v13 = vld [vmem:[#allocation10 + $0x38] sm:$0xff] }
  0x7e   : > { %876 = vmatpush.msra.mxu2 %v831_v36  ;;  %949 = vmatpush.msrb.mxu0 %v918_v60  ;;  %v909_v14 = vld [vmem:[#allocation10 + $0x98] sm:$0xff]  ;;  %v896_v15 = vld [vmem:[#allocation10 + $0x30] sm:$0xff]  ;;  %v895_v17 = vld [vmem:[#allocation10 + $0x28] sm:$0xff] }
  0x7f   : > { %858 = vmatpush.msra.mxu1 %v813_v26  ;;  %930 = vmatpush.msra.mxu3 %v901_v61  ;;  %v908_v16 = vld [vmem:[#allocation10 + $0x90] sm:$0xff]  ;;  %v907_v18 = vld [vmem:[#allocation10 + $0x88] sm:$0xff]  ;;  %v894_v19 = vld [vmem:[#allocation10 + $0x20] sm:$0xff] }
  0x80   : > { %877 = vmatpush.msra.mxu2 %v830_v37  ;;  %950 = vmatpush.msrb.mxu0 %v917_v62  ;;  %v906_v20 = vld [vmem:[#allocation10 + $0x80] sm:$0xff]  ;;  %v893_v21 = vld [vmem:[#allocation10 + $0x18] sm:$0xff]  ;;  %v892_v22 = vld [vmem:[#allocation10 + $0x10] sm:$0xff] }
  0x81   : > { %859 = vmatpush.msra.mxu1 %v812_v27  ;;  %931 = vmatpush.msra.mxu3 %v900_v63  ;;  %v891_v23 = vld [vmem:[#allocation10 + $0x8] sm:$0xff]  ;;  %v890_v24 = vld [vmem:[#allocation10] sm:$0xff]  ;;  %v1028_v25 = vld [vmem:[#allocation13 + $0x78] sm:$0xff] }
  0x82   : > { %878 = vmatpush.msra.mxu2 %v829_v38  ;;  %951 = vmatpush.msrb.mxu0 %v916_v0  ;;  %v1027_v26 = vld [vmem:[#allocation13 + $0x70] sm:$0xff]  ;;  %v1026_v27 = vld [vmem:[#allocation13 + $0x68] sm:$0xff]  ;;  %v1722_v36 = vld [vmem:[%s2495_s4] ss:$0 sm:$0xff] }
  0x83   : > { %860 = vmatpush.msra.mxu1 %v811_v28  ;;  %932 = vmatpush.msra.mxu3 %v899_v9  ;;  %v1025_v28 = vld [vmem:[#allocation13 + $0x60] sm:$0xff]  ;;  %v1020_v37 = vld [vmem:[#allocation13 + $0x38] sm:$0xff]  ;;  %v1019_v38 = vld [vmem:[#allocation13 + $0x30] sm:$0xff] }
  0x84   : > { %879 = vmatpush.msra.mxu2 %v828_v39  ;;  %952 = vmatpush.msrb.mxu0 %v915_v5  ;;  %v1016_v46 = vld [vmem:[#allocation13 + $0x18] sm:$0xff]  ;;  %v1039_v54 = vld [vmem:[#allocation13 + $0xd0] sm:$0xff]  ;;  %v1038_v56 = vld [vmem:[#allocation13 + $0xc8] sm:$0xff] }
  0x85   : > { %861 = vmatpush.msra.mxu1 %v810_v29  ;;  %933 = vmatpush.msra.mxu3 %v898_v11  ;;  %v1044_v29 = vld [vmem:[#allocation13 + $0xf8] sm:$0xff]  ;;  %v1185_v55 = vld [vmem:[#allocation16 + $0x70] sm:$0xff]  ;;  %v1037_v57 = vld [vmem:[#allocation13 + $0xc0] sm:$0xff] }
  0x86   : > { %880 = vmatpush.msra.mxu2 %v827_v41  ;;  %953 = vmatpush.msrb.mxu0 %v914_v6  ;;  %v1018_v41 = vld [vmem:[#allocation13 + $0x28] sm:$0xff]  ;;  %v1186_v53 = vld [vmem:[#allocation16 + $0x78] sm:$0xff]  ;;  %v1035_v59 = vld [vmem:[#allocation13 + $0xb0] sm:$0xff] }
  0x87   : > { %988 = vmatpush.msrb.mxu1 %v983_v30  ;;  %934 = vmatpush.msra.mxu3 %v897_v13  ;;  %v1043_v30 = vld [vmem:[#allocation13 + $0xf0] sm:$0xff]  ;;  %v1036_v58 = vld [vmem:[#allocation13 + $0xb8] sm:$0xff]  ;;  %v1184_v60 = vld [vmem:[#allocation16 + $0x68] sm:$0xff] }
  0x88   : > { %881 = vmatpush.msra.mxu2 %v826_v43  ;;  %954 = vmatpush.msrb.mxu0 %v913_v7  ;;  %v1034_v61 = vld [vmem:[#allocation13 + $0xa8] sm:$0xff]  ;;  %v1183_v62 = vld [vmem:[#allocation16 + $0x60] sm:$0xff]  ;;  %v1182_v0 = vld [vmem:[#allocation16 + $0x58] sm:$0xff] }
  0x89   : > { %989 = vmatpush.msrb.mxu1 %v982_v31  ;;  %935 = vmatpush.msra.mxu3 %v896_v15  ;;  %v1024_v31 = vld [vmem:[#allocation13 + $0x58] sm:$0xff]  ;;  %v1033_v63 = vld [vmem:[#allocation13 + $0xa0] sm:$0xff]  ;;  %v1030_v5 = vld [vmem:[#allocation13 + $0x88] sm:$0xff] }
  0x8a   : > { %955 = vmatpush.msrb.mxu0 %v912_v8  ;;  %1049 = vmatpush.msrb.mxu2 %v1028_v25  ;;  %v1179_v6 = vld [vmem:[#allocation16 + $0x40] sm:$0xff]  ;;  %v1178_v8 = vld [vmem:[#allocation16 + $0x38] sm:$0xff]  ;;  %v1177_v9 = vld [vmem:[#allocation16 + $0x30] sm:$0xff] }
  0x8b   : > { %990 = vmatpush.msrb.mxu1 %v981_v32  ;;  %936 = vmatpush.msra.mxu3 %v895_v17  ;;  %v1042_v32 = vld [vmem:[#allocation13 + $0xe8] sm:$0xff]  ;;  %v1029_v7 = vld [vmem:[#allocation13 + $0x80] sm:$0xff]  ;;  %v1173_v13 = vld [vmem:[#allocation16 + $0x10] sm:$0xff] }
  0x8c   : > { %956 = vmatpush.msrb.mxu0 %v911_v10  ;;  %1050 = vmatpush.msrb.mxu2 %v1027_v26  ;;  %v1176_v10 = vld [vmem:[#allocation16 + $0x28] sm:$0xff]  ;;  %v1175_v11 = vld [vmem:[#allocation16 + $0x20] sm:$0xff]  ;;  %v1124_v17 = vld [vmem:[#allocation15 + $0xf8] sm:$0xff] }
  0x8d   : > { %991 = vmatpush.msrb.mxu1 %v980_v33  ;;  %937 = vmatpush.msra.mxu3 %v894_v19  ;;  %v1023_v33 = vld [vmem:[#allocation13 + $0x50] sm:$0xff]  ;;  %v1171_v15 = vld [vmem:[#allocation16] sm:$0xff]  ;;  %v1723_v26 = vld [vmem:[%s2499_s8] ss:$0 sm:$0xff] }
  0x8e   : > { %957 = vmatpush.msrb.mxu0 %v910_v12  ;;  %1051 = vmatpush.msrb.mxu2 %v1026_v27  ;;  %v1174_v12 = vld [vmem:[#allocation16 + $0x18] sm:$0xff]  ;;  %v1123_v19 = vld [vmem:[#allocation15 + $0xf0] sm:$0xff] }
  0x8f   : > { %992 = vmatpush.msrb.mxu1 %v979_v34  ;;  %938 = vmatpush.msra.mxu3 %v893_v21  ;;  %v1022_v34 = vld [vmem:[#allocation13 + $0x48] sm:$0xff] }
  0x90   : > { %958 = vmatpush.msrb.mxu0 %v909_v14  ;;  %1052 = vmatpush.msrb.mxu2 %v1025_v28  ;;  %v1172_v14 = vld [vmem:[#allocation16 + $0x8] sm:$0xff]  ;;  %v1104_v28 = vld [vmem:[#allocation15 + $0x58] sm:$0xff] }
  0x91   : > { %993 = vmatpush.msrb.mxu1 %v978_v35  ;;  %939 = vmatpush.msra.mxu3 %v892_v22  ;;  %v1021_v35 = vld [vmem:[#allocation13 + $0x40] sm:$0xff]  ;;  %v1106_v21 = vld [vmem:[#allocation15 + $0x68] sm:$0xff] }
  0x92   : > { %959 = vmatpush.msrb.mxu0 %v908_v16  ;;  %1053 = vmatpush.msrb.mxu2 %v1024_v31  ;;  %v1108_v16 = vld [vmem:[#allocation15 + $0x78] sm:$0xff]  ;;  %v1122_v22 = vld [vmem:[#allocation15 + $0xe8] sm:$0xff] }
  0x93   : > { %994 = vmatpush.msrb.mxu1 %v977_v40  ;;  %940 = vmatpush.msra.mxu3 %v891_v23  ;;  %v1105_v23 = vld [vmem:[#allocation15 + $0x60] sm:$0xff] }
  0x94   : > { %960 = vmatpush.msrb.mxu0 %v907_v18  ;;  %1054 = vmatpush.msrb.mxu2 %v1023_v33  ;;  %v1107_v18 = vld [vmem:[#allocation15 + $0x70] sm:$0xff] }
  0x95   : > { %995 = vmatpush.msrb.mxu1 %v976_v42  ;;  %941 = vmatpush.msra.mxu3 %v890_v24  ;;  %v1121_v24 = vld [vmem:[#allocation15 + $0xe0] sm:$0xff]  ;;  %v1103_v33 = vld [vmem:[#allocation15 + $0x50] sm:$0xff] }
  0x96   : > { %961 = vmatpush.msrb.mxu0 %v906_v20  ;;  %1055 = vmatpush.msrb.mxu2 %v1022_v34  ;;  %v1724_v20 = vld [vmem:[%s2497_s6] ss:$0 sm:$0xff]  ;;  %v1119_v34 = vld [vmem:[#allocation15 + $0xd0] sm:$0xff] }
  0x97   : > { %996 = vmatpush.msrb.mxu1 %v975_v44  ;;  %1069 = vmatpush.msrb.mxu3 %v1044_v29  ;;  %v1017_v44 = vld [vmem:[#allocation13 + $0x20] sm:$0xff]  ;;  %v1120_v29 = vld [vmem:[#allocation15 + $0xd8] sm:$0xff] }
  0x98   : > { %1056 = vmatpush.msrb.mxu2 %v1021_v35  ;;  %1129 = vmatpush.msra.mxu0 %v1108_v16  ;;  %v1240_v16 = vld [vmem:[#allocation18 + $0xc0] sm:$0xff] }
  0x99   : > { %997 = vmatpush.msrb.mxu1 %v974_v45  ;;  %1070 = vmatpush.msrb.mxu3 %v1043_v30 }
  0x9a   : > { %1057 = vmatpush.msrb.mxu2 %v1020_v37  ;;  %1130 = vmatpush.msra.mxu0 %v1107_v18  ;;  %v1102_v37 = vld [vmem:[#allocation15 + $0x48] sm:$0xff]  ;;  %v1238_v18 = vld [vmem:[#allocation18 + $0xb0] sm:$0xff] }
  0x9b   : > { %998 = vmatpush.msrb.mxu1 %v973_v47  ;;  %1071 = vmatpush.msrb.mxu3 %v1042_v32  ;;  %v1015_v47 = vld [vmem:[#allocation13 + $0x10] sm:$0xff] }
  0x9c   : > { %1058 = vmatpush.msrb.mxu2 %v1019_v38  ;;  %1131 = vmatpush.msra.mxu0 %v1106_v21  ;;  %v1118_v38 = vld [vmem:[#allocation15 + $0xc8] sm:$0xff]  ;;  %v1224_v21 = vld [vmem:[#allocation18 + $0x40] sm:$0xff] }
  0x9d   : > { %999 = vmatpush.msrb.mxu1 %v972_v48  ;;  %v1014_v48 = vld [vmem:[#allocation13 + $0x8] sm:$0xff] }
  0x9e   : > { %1059 = vmatpush.msrb.mxu2 %v1018_v41  ;;  %1132 = vmatpush.msra.mxu0 %v1105_v23  ;;  %v1117_v41 = vld [vmem:[#allocation15 + $0xc0] sm:$0xff]  ;;  %v1223_v23 = vld [vmem:[#allocation18 + $0x38] sm:$0xff] }
  0x9f   : > { %1000 = vmatpush.msrb.mxu1 %v971_v49 }
  0xa0   : > { %1060 = vmatpush.msrb.mxu2 %v1017_v44  ;;  %1133 = vmatpush.msra.mxu0 %v1104_v28  ;;  %v1116_v44 = vld [vmem:[#allocation15 + $0xb8] sm:$0xff]  ;;  %v1233_v28 = vld [vmem:[#allocation18 + $0x88] sm:$0xff] }
  0xa1   : > { %1001 = vmatpush.msrb.mxu1 %v970_v50  ;;  %v1041_v50 = vld [vmem:[#allocation13 + $0xe0] sm:$0xff] }
  0xa2   : > { %1061 = vmatpush.msrb.mxu2 %v1016_v46  ;;  %1072 = vmatpush.msrb.mxu3 %v1041_v50  ;;  %v1114_v46 = vld [vmem:[#allocation15 + $0xa8] sm:$0xff]  ;;  %v1099_v50 = vld [vmem:[#allocation15 + $0x30] sm:$0xff] }
  0xa3   : > { %1002 = vmatpush.msrb.mxu1 %v969_v51  ;;  %v1013_v51 = vld [vmem:[#allocation13] sm:$0xff]  ;;  %1134 = vmatpush.msra.mxu0 %v1103_v33  ;;  %v1217_v33 = vld [vmem:[#allocation18 + $0x8] sm:$0xff] }
  0xa4   : > { %1062 = vmatpush.msrb.mxu2 %v1015_v47  ;;  %v1113_v47 = vld [vmem:[#allocation15 + $0xa0] sm:$0xff] }
  0xa5   : > { %1003 = vmatpush.msrb.mxu1 %v968_v52  ;;  %v1040_v52 = vld [vmem:[#allocation13 + $0xd8] sm:$0xff]  ;;  %1135 = vmatpush.msra.mxu0 %v1102_v37  ;;  %v1310_v37 = vld [vmem:[#allocation19 + $0x70] sm:$0xff] }
  0xa6   : > { %1063 = vmatpush.msrb.mxu2 %v1014_v48  ;;  %1073 = vmatpush.msrb.mxu3 %v1040_v52  ;;  %v1100_v48 = vld [vmem:[#allocation15 + $0x38] sm:$0xff]  ;;  %v1098_v52 = vld [vmem:[#allocation15 + $0x28] sm:$0xff] }
  0xa8   : > { %1064 = vmatpush.msrb.mxu2 %v1013_v51  ;;  %1074 = vmatpush.msrb.mxu3 %v1039_v54  ;;  %v1111_v51 = vld [vmem:[#allocation15 + $0x90] sm:$0xff]  ;;  %v1097_v54 = vld [vmem:[#allocation15 + $0x20] sm:$0xff] }
  0xaa   : > { %1075 = vmatpush.msrb.mxu3 %v1038_v56  ;;  %v1096_v56 = vld [vmem:[#allocation15 + $0x18] sm:$0xff] }
  0xac   : > { %1076 = vmatpush.msrb.mxu3 %v1037_v57  ;;  %v1095_v57 = vld [vmem:[#allocation15 + $0x10] sm:$0xff] }
  0xae   : > { %1077 = vmatpush.msrb.mxu3 %v1036_v58  ;;  %v1094_v58 = vld [vmem:[#allocation15 + $0x8] sm:$0xff] }
  0xb0   : > { %1078 = vmatpush.msrb.mxu3 %v1035_v59  ;;  %v1093_v59 = vld [vmem:[#allocation15] sm:$0xff] }
  0xb2   : > { %1079 = vmatpush.msrb.mxu3 %v1034_v61  ;;  %v1247_v61 = vld [vmem:[#allocation18 + $0xf8] sm:$0xff] }
  0xb4   : > { %1080 = vmatpush.msrb.mxu3 %v1033_v63  ;;  %v1246_v63 = vld [vmem:[#allocation18 + $0xf0] sm:$0xff] }
  0xe8   : > { %v804_v2 = vpop.f32.mrf.mxu0 }
  0xe9   : > { %v805_v3 = vadd.f32 %v1721_v1, %v804_v2  ;;  %v1032_v1 = vld [vmem:[#allocation13 + $0x98] sm:$0xff]  ;;  %v1181_v2 = vld [vmem:[#allocation16 + $0x50] sm:$0xff] }
  0xea   : > { %1081 = vmatpush.msrb.mxu3 %v1032_v1  ;;  %v1245_v1 = vld [vmem:[#allocation18 + $0xe8] sm:$0xff] }
  0xeb   : > { %807 = vst [vmem:[#allocation2 + $0x4] sm:$0xff] %v805_v3  ;;  %882 = vmatmul.f32.vlgmr.msra.gmra.mxu2 %v805_v3 }
  0xec   : > { %1191 = vmatpush.msra.mxu2 %v1186_v53  ;;  %v1110_v53 = vld [vmem:[#allocation15 + $0x88] sm:$0xff] }
  0xee   : > { %1192 = vmatpush.msra.mxu2 %v1185_v55  ;;  %v1109_v55 = vld [vmem:[#allocation15 + $0x80] sm:$0xff] }
  0xf0   : > { %1193 = vmatpush.msra.mxu2 %v1184_v60  ;;  %v1231_v60 = vld [vmem:[#allocation18 + $0x78] sm:$0xff] }
  0xf2   : > { %v808_v4 = vld [vmem:[#allocation2 + $0x3] sm:$0xff]  ;;  %1194 = vmatpush.msra.mxu2 %v1183_v62  ;;  %v1230_v62 = vld [vmem:[#allocation18 + $0x70] sm:$0xff] }
  0xf3   : > { %862 = vmatmul.f32.vlgmr.msra.gmra.mxu1 %v808_v4  ;;  %v1180_v4 = vld [vmem:[#allocation16 + $0x48] sm:$0xff] }
  0xf4   : > { %1195 = vmatpush.msra.mxu2 %v1182_v0  ;;  %1149 = vmatpush.msra.mxu1 %v1124_v17  ;;  %v1229_v0 = vld [vmem:[#allocation18 + $0x68] sm:$0xff]  ;;  %v1239_v17 = vld [vmem:[#allocation18 + $0xb8] sm:$0xff] }
  0xf6   : > { %1196 = vmatpush.msra.mxu2 %v1181_v2  ;;  %1150 = vmatpush.msra.mxu1 %v1123_v19  ;;  %v1228_v2 = vld [vmem:[#allocation18 + $0x60] sm:$0xff]  ;;  %v1225_v19 = vld [vmem:[#allocation18 + $0x48] sm:$0xff] }
  0xf8   : > { %1197 = vmatpush.msra.mxu2 %v1180_v4  ;;  %1151 = vmatpush.msra.mxu1 %v1122_v22  ;;  %v1227_v4 = vld [vmem:[#allocation18 + $0x58] sm:$0xff]  ;;  %v1236_v22 = vld [vmem:[#allocation18 + $0xa0] sm:$0xff] }
  0xfa   : > { %1198 = vmatpush.msra.mxu2 %v1179_v6  ;;  %1152 = vmatpush.msra.mxu1 %v1121_v24  ;;  %v1226_v6 = vld [vmem:[#allocation18 + $0x50] sm:$0xff]  ;;  %v1235_v24 = vld [vmem:[#allocation18 + $0x98] sm:$0xff] }
  0xfb   : > { %1004 = vmatmul.f32.vlgmr.msrb.gmra.mxu1 %v805_v3  ;;  %v1031_v3 = vld [vmem:[#allocation13 + $0x90] sm:$0xff] }
  0xfc   : > { %1082 = vmatpush.msrb.mxu3 %v1031_v3  ;;  %1199 = vmatpush.msra.mxu2 %v1178_v8  ;;  %v1244_v3 = vld [vmem:[#allocation18 + $0xe0] sm:$0xff]  ;;  %v1725_v8 = vld [vmem:[%s2501_s10] ss:$0 sm:$0xff] }
  0xfd   : > { %1153 = vmatpush.msra.mxu1 %v1120_v29  ;;  %v1220_v29 = vld [vmem:[#allocation18 + $0x20] sm:$0xff] }
  0xfe   : > { %1083 = vmatpush.msrb.mxu3 %v1030_v5  ;;  %1200 = vmatpush.msra.mxu2 %v1177_v9  ;;  %v1243_v5 = vld [vmem:[#allocation18 + $0xd8] sm:$0xff] }
  0xff   : > { %1154 = vmatpush.msra.mxu1 %v1119_v34  ;;  %v1216_v34 = vld [vmem:[#allocation18] sm:$0xff] }
 0x100   : > { %1084 = vmatpush.msrb.mxu3 %v1029_v7  ;;  %1201 = vmatpush.msra.mxu2 %v1176_v10  ;;  %v1242_v7 = vld [vmem:[#allocation18 + $0xd0] sm:$0xff] }
 0x101   : > { %1155 = vmatpush.msra.mxu1 %v1118_v38  ;;  %v1326_v38 = vld [vmem:[#allocation19 + $0xf0] sm:$0xff] }
 0x102   : > { %1202 = vmatpush.msra.mxu2 %v1175_v11 }
 0x103   : > { %1156 = vmatpush.msra.mxu1 %v1117_v41  ;;  %v1308_v41 = vld [vmem:[#allocation19 + $0x60] sm:$0xff] }
 0x104   : > { %1203 = vmatpush.msra.mxu2 %v1174_v12 }
 0x105   : > { %1157 = vmatpush.msra.mxu1 %v1116_v44  ;;  %v1323_v44 = vld [vmem:[#allocation19 + $0xd8] sm:$0xff] }
 0x106   : > { %1204 = vmatpush.msra.mxu2 %v1173_v13 }
 0x108   : > { %1205 = vmatpush.msra.mxu2 %v1172_v14 }
 0x10a   : > { %1206 = vmatpush.msra.mxu2 %v1171_v15  ;;  %v1241_v15 = vld [vmem:[#allocation18 + $0xc8] sm:$0xff] }
 0x16e   : > { %v883_v42 = vpop.f32.mrf.mxu2 }
 0x170   : > { %v863_v39 = vpop.f32.mrf.mxu1 }
 0x171   : > { %v864_v40 = vadd.f32 %v1722_v36, %v863_v39 }
 0x173   : > { %v884_v43 = vadd.f32 %v883_v42, %v864_v40  ;;  %v1101_v40 = vld [vmem:[#allocation15 + $0x40] sm:$0xff] }
 0x174   : > { %1136 = vmatpush.msra.mxu0 %v1101_v40  ;;  %v1325_v40 = vld [vmem:[#allocation19 + $0xe8] sm:$0xff] }
 0x175   : > { %v886_v45 = vmax.f32 %v884_v43, 0.0 }
 0x176   : > { %1137 = vmatpush.msra.mxu0 %v1100_v48 }
 0x177   : > { %887 = vst [vmem:[#allocation3 + $0x4] sm:$0xff] %v886_v45  ;;  %962 = vmatmul.f32.vlgmr.msrb.gmra.mxu0 %v886_v45  ;;  %v1115_v45 = vld [vmem:[#allocation15 + $0xb0] sm:$0xff] }
 0x178   : > { %v1005_v30 = vpop.f32.mrf.mxu1  ;;  %1158 = vmatpush.msra.mxu1 %v1115_v45  ;;  %1138 = vmatpush.msra.mxu0 %v1099_v50  ;;  %v1727_v45 = vld [vmem:[%s2542_s7] ss:$0 sm:$0xff]  ;;  %s2546_s7 = sld [smem:[#allocation42_spill]] }
 0x179   : > { %v1006_v35 = vadd.f32 %v1723_v26, %v1005_v30  ;;  %v1234_v26 = vld [vmem:[#allocation18 + $0x90] sm:$0xff]  ;;  %v1232_v30 = vld [vmem:[#allocation18 + $0x80] sm:$0xff] }
 0x17a   : > { %1159 = vmatpush.msra.mxu1 %v1114_v46  ;;  %1139 = vmatpush.msra.mxu0 %v1098_v52 }
 0x17c   : > { %1160 = vmatpush.msra.mxu1 %v1113_v47  ;;  %1140 = vmatpush.msra.mxu0 %v1097_v54  ;;  %v1726_v47 = vld [vmem:[%s2543_s1] ss:$0 sm:$0xff]  ;;  %s1390_s1 = sshll.u32 %s768_s25, 4  ;;  %s1391_s1 = int_to_ptr.vmem [resolvable:$true] %s1390_s1 }
 0x17e   : > { %v888_v49 = vld [vmem:[#allocation3 + $0x3] sm:$0xff]  ;;  %1141 = vmatpush.msra.mxu0 %v1096_v56  ;;  %s1388_s13 = scalar_lea.hbm %s2546_s7, %s1578_s12  ;;  %s2050_s26 = scalar_lea.hbm %s2546_s7, 16 }
 0x17f   : > { %942 = vmatmul.f32.vlgmr.msra.gmra.mxu3 %v888_v49  ;;  %v1112_v49 = vld [vmem:[#allocation15 + $0x98] sm:$0xff]  ;;  %s1392_s2 = sshll.u32 %s1388_s13, 4  ;;  %s1393_s2 = int_to_ptr.hbm [resolvable:$true] %s1392_s2 }
 0x180   : > { %1161 = vmatpush.msra.mxu1 %v1112_v49  ;;  %1142 = vmatpush.msra.mxu0 %v1095_v57  ;;  %v1322_v57 = vld [vmem:[#allocation19 + $0xd0] sm:$0xff]  ;;  %s2044_s18 = sshra.s32 %s1393_s2, 4  ;;  %s2045_s18 = int_to_ptr.hbm [resolvable:$true] %s2044_s18 }
 0x181   : > { %1252 = vmatpush.msra.mxu3 %v1231_v60  ;;  %v1321_v60 = vld [vmem:[#allocation19 + $0xc8] sm:$0xff]  ;;  %p2051_p12 = scmp.lt.s32.totalorder %s2045_s18, %s2546_s7 }
 0x182   : > { %1162 = vmatpush.msra.mxu1 %v1111_v51  ;;  %1143 = vmatpush.msra.mxu0 %v1094_v58  ;;  %v1306_v58 = vld [vmem:[#allocation19 + $0x50] sm:$0xff] }
 0x183   : > { %1253 = vmatpush.msra.mxu3 %v1230_v62  ;;  %v1304_v62 = vld [vmem:[#allocation19 + $0x40] sm:$0xff] }
 0x184   : > { %1163 = vmatpush.msra.mxu1 %v1110_v53  ;;  %1144 = vmatpush.msra.mxu0 %v1093_v59  ;;  %v1305_v59 = vld [vmem:[#allocation19 + $0x48] sm:$0xff] }
 0x185   : > { %1254 = vmatpush.msra.mxu3 %v1229_v0  ;;  %v1318_v0 = vld [vmem:[#allocation19 + $0xb0] sm:$0xff] }
 0x186   : > { %1164 = vmatpush.msra.mxu1 %v1109_v55  ;;  %1272 = vmatpush.msrb.mxu0 %v1247_v61  ;;  %v1320_v61 = vld [vmem:[#allocation19 + $0xc0] sm:$0xff] }
 0x187   : > { %1255 = vmatpush.msra.mxu3 %v1228_v2  ;;  %v1316_v2 = vld [vmem:[#allocation19 + $0xa0] sm:$0xff] }
 0x188   : > { %1273 = vmatpush.msrb.mxu0 %v1246_v63  ;;  %v1319_v63 = vld [vmem:[#allocation19 + $0xb8] sm:$0xff] }
 0x189   : > { %1256 = vmatpush.msra.mxu3 %v1227_v4  ;;  %v1315_v4 = vld [vmem:[#allocation19 + $0x98] sm:$0xff] }
 0x18a   : > { %1274 = vmatpush.msrb.mxu0 %v1245_v1  ;;  %v1317_v1 = vld [vmem:[#allocation19 + $0xa8] sm:$0xff] }
 0x18b   : > { %1257 = vmatpush.msra.mxu3 %v1226_v6  ;;  %v1314_v6 = vld [vmem:[#allocation19 + $0x90] sm:$0xff] }
 0x18c   : > { %1275 = vmatpush.msrb.mxu0 %v1244_v3  ;;  %v1303_v3 = vld [vmem:[#allocation19 + $0x38] sm:$0xff] }
 0x18d   : > { %1258 = vmatpush.msra.mxu3 %v1225_v19 }
 0x18e   : > { %1276 = vmatpush.msrb.mxu0 %v1243_v5  ;;  %v1302_v5 = vld [vmem:[#allocation19 + $0x30] sm:$0xff] }
 0x18f   : > { %1259 = vmatpush.msra.mxu3 %v1224_v21 }
 0x190   : > { %1277 = vmatpush.msrb.mxu0 %v1242_v7  ;;  %v1301_v7 = vld [vmem:[#allocation19 + $0x28] sm:$0xff] }
 0x191   : > { %1260 = vmatpush.msra.mxu3 %v1223_v23 }
 0x192   : > { %1278 = vmatpush.msrb.mxu0 %v1241_v15  ;;  %v1728_v15 = vld [vmem:[%s2544_s22] ss:$0 sm:$0xff]  ;;  %s2046_s22 = scalar_lea.hbm %s2045_s18, 8 }
 0x193   : > { %p2047_p1 = scmp.ne.s32.totalorder %s2045_s18, %s2046_s22  ;;  %p2052_p8 = scmp.lt.s32.totalorder %s2050_s26, %s2046_s22 }
 0x194   : > { %1279 = vmatpush.msrb.mxu0 %v1240_v16 }
 0x195   : > { %p2048_p3 = pnand %p2047_p1, %p2363_p13  ;;  %p2053_p7 = por %p2052_p8, %p2051_p12 }
 0x196   : > { %1280 = vmatpush.msrb.mxu0 %v1239_v17 }
 0x197   : > { %p2049_p5 = pneg %p2048_p3 }
 0x198   : > { %1281 = vmatpush.msrb.mxu0 %v1238_v18 }
 0x199   : > { %p2054_p9 = pnand %p2053_p7, %p2049_p5 }
 0x1f4   : > { %v963_v31 = vpop.f32.mrf.mxu0 }
 0x202   : > { %v943_v25 = vpop.f32.mrf.mxu3 }
 0x203   : > { %v944_v27 = vadd.f32 %v1724_v20, %v943_v25  ;;  %v1237_v20 = vld [vmem:[#allocation18 + $0xa8] sm:$0xff]  ;;  %v1222_v25 = vld [vmem:[#allocation18 + $0x30] sm:$0xff] }
 0x204   : > { %1282 = vmatpush.msrb.mxu0 %v1237_v20  ;;  %1261 = vmatpush.msra.mxu3 %v1222_v25 }
 0x205   : > { %v964_v32 = vadd.f32 %v963_v31, %v944_v27  ;;  %v1221_v27 = vld [vmem:[#allocation18 + $0x28] sm:$0xff]  ;;  %v1219_v31 = vld [vmem:[#allocation18 + $0x18] sm:$0xff] }
 0x206   : > { %1283 = vmatpush.msrb.mxu0 %v1236_v22  ;;  %1262 = vmatpush.msra.mxu3 %v1221_v27  ;;  %v1729_v22 = vld [vmem:[%s2545_s5] ss:$0 sm:$0xff] }
 0x207   : > { %v966_v36 = vmax.f32 %v964_v32, 0.0  ;;  %v1218_v32 = vld [vmem:[#allocation18 + $0x10] sm:$0xff] }
 0x208   : > { %1284 = vmatpush.msrb.mxu0 %v1235_v24  ;;  %1263 = vmatpush.msra.mxu3 %v1220_v29 }
 0x209   : > { %v1008_v39 = vadd.f32 %v1006_v35, %v966_v36  ;;  %v1311_v35 = vld [vmem:[#allocation19 + $0x78] sm:$0xff] }
 0x20a   : > { %1285 = vmatpush.msrb.mxu0 %v1234_v26  ;;  %1264 = vmatpush.msra.mxu3 %v1219_v31  ;;  %v1327_v36 = vld [vmem:[#allocation19 + $0xf8] sm:$0xff] }
 0x20b   : > { %v1009_v42 = vmax.f32 %v1008_v39, 0.0  ;;  %1332 = vmatpush.msrb.mxu1 %v1311_v35  ;;  %v1309_v39 = vld [vmem:[#allocation19 + $0x68] sm:$0xff] }
 0x20c   : > { %1286 = vmatpush.msrb.mxu0 %v1233_v28  ;;  %1265 = vmatpush.msra.mxu3 %v1218_v32 }
 0x20d   : > { %1010 = vst [vmem:[#allocation2 + $0x4] sm:$0xff] %v1009_v42  ;;  %1085 = vmatmul.f32.vlgmr.msrb.gmra.mxu3 %v1009_v42  ;;  %1333 = vmatpush.msrb.mxu1 %v1310_v37 }
 0x20e   : > { %1287 = vmatpush.msrb.mxu0 %v1232_v30  ;;  %1266 = vmatpush.msra.mxu3 %v1217_v33 }
 0x20f   : > { %1334 = vmatpush.msrb.mxu1 %v1309_v39 }
 0x210   : > { %1267 = vmatpush.msra.mxu3 %v1216_v34 }
 0x211   : > { %1335 = vmatpush.msrb.mxu1 %v1308_v41 }
 0x214   : > { %v1011_v43 = vld [vmem:[#allocation2 + $0x2] sm:$0xff] }
 0x215   : > { %1065 = vmatmul.f32.vlgmr.msrb.gmra.mxu2 %v1011_v43  ;;  %v1307_v43 = vld [vmem:[#allocation19 + $0x58] sm:$0xff] }
 0x216   : > { %1352 = vmatpush.msrb.mxu2 %v1327_v36  ;;  %1336 = vmatpush.msrb.mxu1 %v1307_v43 }
 0x218   : > { %1353 = vmatpush.msrb.mxu2 %v1326_v38  ;;  %1337 = vmatpush.msrb.mxu1 %v1306_v58 }
 0x21a   : > { %1354 = vmatpush.msrb.mxu2 %v1325_v40  ;;  %1338 = vmatpush.msrb.mxu1 %v1305_v59 }
 0x21c   : > { %1339 = vmatpush.msrb.mxu1 %v1304_v62 }
 0x21d   : > { %1207 = vmatmul.f32.vlgmr.msra.gmra.mxu2 %v1009_v42  ;;  %v1324_v42 = vld [vmem:[#allocation19 + $0xe0] sm:$0xff] }
 0x21e   : > { %1355 = vmatpush.msrb.mxu2 %v1324_v42  ;;  %1340 = vmatpush.msrb.mxu1 %v1303_v3 }
 0x220   : > { %1356 = vmatpush.msrb.mxu2 %v1323_v44  ;;  %1341 = vmatpush.msrb.mxu1 %v1302_v5 }
 0x222   : > { %1357 = vmatpush.msrb.mxu2 %v1322_v57  ;;  %1342 = vmatpush.msrb.mxu1 %v1301_v7 }
 0x224   : > { %1358 = vmatpush.msrb.mxu2 %v1321_v60 }
 0x226   : > { %1359 = vmatpush.msrb.mxu2 %v1320_v61 }
 0x228   : > { %1360 = vmatpush.msrb.mxu2 %v1319_v63 }
 0x22a   : > { %1361 = vmatpush.msrb.mxu2 %v1318_v0 }
 0x22c   : > { %1362 = vmatpush.msrb.mxu2 %v1317_v1 }
 0x22e   : > { %1363 = vmatpush.msrb.mxu2 %v1316_v2 }
 0x230   : > { %1364 = vmatpush.msrb.mxu2 %v1315_v4 }
 0x232   : > { %1365 = vmatpush.msrb.mxu2 %v1314_v6 }
 0x290   : > { %v1086_v11 = vpop.f32.mrf.mxu3 }
 0x298   : > { %v1066_v9 = vpop.f32.mrf.mxu2 }
 0x299   : > { %v1067_v10 = vadd.f32 %v1725_v8, %v1066_v9  ;;  %v1313_v8 = vld [vmem:[#allocation19 + $0x88] sm:$0xff]  ;;  %v1300_v9 = vld [vmem:[#allocation19 + $0x20] sm:$0xff] }
 0x29a   : > { %1366 = vmatpush.msrb.mxu2 %v1313_v8  ;;  %1343 = vmatpush.msrb.mxu1 %v1300_v9 }
 0x29b   : > { %v1087_v12 = vadd.f32 %v1086_v11, %v1067_v10  ;;  %v1312_v10 = vld [vmem:[#allocation19 + $0x80] sm:$0xff]  ;;  %v1299_v11 = vld [vmem:[#allocation19 + $0x18] sm:$0xff] }
 0x29c   : > { %1367 = vmatpush.msrb.mxu2 %v1312_v10  ;;  %1344 = vmatpush.msrb.mxu1 %v1299_v11 }
 0x29d   : > { %v1089_v13 = vmax.f32 %v1087_v12, 0.0  ;;  %v1298_v12 = vld [vmem:[#allocation19 + $0x10] sm:$0xff] }
 0x29e   : > { %1345 = vmatpush.msrb.mxu1 %v1298_v12 }
 0x29f   : > { %1090 = vst [vmem:[#allocation3 + $0x4] sm:$0xff] %v1089_v13  ;;  %1165 = vmatmul.f32.vlgmr.msra.gmra.mxu1 %v1089_v13  ;;  %v1297_v13 = vld [vmem:[#allocation19 + $0x8] sm:$0xff] }
 0x2a0   : > { %v1208_v49 = vpop.f32.mrf.mxu2  ;;  %1346 = vmatpush.msrb.mxu1 %v1297_v13 }
 0x2a1   : > { %v1209_v52 = vadd.f32 %v1726_v47, %v1208_v49 }
 0x2a6   : > { %v1091_v14 = vld [vmem:[#allocation3 + $0x2] sm:$0xff] }
 0x2a7   : > { %1145 = vmatmul.f32.vlgmr.msra.gmra.mxu0 %v1091_v14  ;;  %v1296_v14 = vld [vmem:[#allocation19] sm:$0xff] }
 0x2a8   : > { %1347 = vmatpush.msrb.mxu1 %v1296_v14 }
 0x31c   : > { %v1166_v50 = vpop.f32.mrf.mxu1 }
 0x324   : > { %v1146_v46 = vpop.f32.mrf.mxu0 }
 0x325   : > { %v1147_v48 = vadd.f32 %v1727_v45, %v1146_v46 }
 0x327   : > { %v1167_v51 = vadd.f32 %v1166_v50, %v1147_v48 }
 0x329   : > { %v1169_v53 = vmax.f32 %v1167_v51, 0.0 }
 0x32b   : > { %v1211_v54 = vadd.f32 %v1209_v52, %v1169_v53 }
 0x32d   : > { %v2445_v55 = vmax.f32 %v1211_v54, 0.0 }
 0x32f   : > { %1213 = vst [vmem:[#allocation2 + $0x4] sm:$0xff] %v2445_v55  ;;  %1288 = vmatmul.f32.vlgmr.msrb.gmra.mxu0 %v2445_v55 }
 0x336   : > { %v1214_v56 = vld [vmem:[#allocation2] sm:$0xff] }
 0x337   : > { %1268 = vmatmul.f32.vlgmr.msra.gmra.mxu3 %v1214_v56 }
 0x3ac   : > { %v1289_v18 = vpop.f32.mrf.mxu0 }
 0x3ba   : > { %v1269_v16 = vpop.f32.mrf.mxu3 }
 0x3bb   : > { %v1270_v17 = vadd.f32 %v1728_v15, %v1269_v16 }
 0x3bd   : > { %v1290_v19 = vadd.f32 %v1289_v18, %v1270_v17 }
 0x3bf   : > { %v1292_v20 = vmax.f32 %v1290_v19, 0.0 }
 0x3c1   : > { %1293 = vst [vmem:[#allocation3 + $0x4] sm:$0xff] %v1292_v20  ;;  %1368 = vmatmul.f32.vlgmr.msrb.gmra.mxu2 %v1292_v20 }
 0x3c8   : > { %v1294_v21 = vld [vmem:[#allocation3] sm:$0xff] }
 0x3c9   : > { %1348 = vmatmul.f32.vlgmr.msrb.gmra.mxu1 %v1294_v21 }
 0x444   : > { %v1369_v25 = vpop.f32.mrf.mxu2 }
 0x446   : > { %v1349_v23 = vpop.f32.mrf.mxu1 }
 0x447   : > { %v1350_v24 = vadd.f32 %v1729_v22, %v1349_v23 }
 0x449   : > { %v1370_v26 = vadd.f32 %v1369_v25, %v1350_v24 }
 0x44b   : > { %v1372_v27 = vmax.f32 %v1370_v26, 0.0 }
 0x44d   : > { %v1374_v28 = vadd.f32 %v1372_v27, %v2445_v55 }
 0x44f   : > { %v1375_v29 = vmax.f32 %v1374_v28, 0.0 }
 0x451   : > { %1376 = vst [vmem:[%s768_s25] sm:$0xff] %v1375_v29 }
 0x452   : > { %2057 = shalt.err (!%p2054_p9)
}
 0x453   : > { %1619 = dma.vmem_to_hbm [thread:$0]  (%p2363_p13), %s1391_s1, 128, %s1393_s2, %s1378_s24  }
 0x454 PF: > { %s1404_s16 = sand.u32 1, %s2104_s0   ;;  %p2547_p10 = scmp.ge.s32.totalorder %s2116_s21, 2 }
 0x455   : > { %s1405_s19 = scalar_lea.sflag [#allocation6], %s1404_s16 }
 0x456   : > { %p1654_p11 = pnand %p2547_p10, %p2368_p4 }
 0x458   : > { %p1655_p0 = pneg %p1654_p11 }
 0x45a   : > { %2099 = dma.done.wait (%p1655_p0), %s1405_s19, 128  }
 0x45b   : > { %2101 = vsyncadd (%p1655_p0), %s1405_s19, 4294967168  ;;  %p37_p2 = scmp.ge.s32.totalorder %s2343_s23, 4   ;;  %s2548_s0 = smov %s2108_s30 }
 0x45c   : > { %s2549_s30 = smov %s2112_s20  ;;  %s2550_s20 = smov %s2355_s29 }
 0x45d   : > { %s2551_s21 = smov %s2343_s23  ;;  %39 = sbr.rel (!%p37_p2) target bundleno = 25 (0x19), region = 177 }
 0x462   :  { %1411 = vsyncpa [#allocation5], 1 }
 0x463   :  { %1413 = vsyncpa [#allocation5 + $0x1], 1 }
 0x464   :  { %1414 = vsyncpa [#allocation8], 1 }
 0x465   :  { %1415 = vsyncpa [#allocation11], 1 }
 0x466   :  { %1416 = vsyncpa [#allocation14], 1 }
 0x467   :  { %1417 = vsyncpa [#allocation17], 1 }
 0x468   :  { %1418 = vsyncpa [#allocation20], 1 }
 0x469   :  { %1419 = vsyncpa [#allocation6], 1 }
 0x46a   :  { %1421 = vsyncpa [#allocation6 + $0x1], 1 }

</bundles_post_ra>
